<compile_context>
chip_gen: v6e
topology: v6e:2x2x1
jax: 0.10.0
libtpu: 0.0.40
codegen_flags: <defaults>
</compile_context>

<pallas_src>
import functools

import numpy as np
import jax
import jax.numpy as jnp
from jax import lax
from jax.experimental import pallas as pl
from jax.experimental.pallas import tpu as pltpu

EPS = 1e-6
_INV_SQRT2 = 0.7071067811865476          # reference-only (exact-erf GELU)
_SQRT_2_OVER_PI = 0.7978845608028654     # kernel tanh-approx GELU

# Row layout of the packed per-channel vector table (shape (_NVEC, C)).
_G1, _B1, _GA, _BA, _BO, _G2, _B2, _GF, _BF, _BF2 = range(10)
_NVEC = 10


def _layernorm(v, g, b):
    mu = jnp.mean(v, axis=-1, keepdims=True)
    var = jnp.mean((v - mu) ** 2, axis=-1, keepdims=True)
    return (v - mu) * lax.rsqrt(var + EPS) * g + b


def _gelu_tanh(v):
    # tanh-approx GELU: tanh runs on the EUP slot; exact-erf lowers to a long
    # VALU polynomial.  |error| vs exact GELU << the test tolerance.
    return 0.5 * v * (1.0 + jnp.tanh(_SQRT_2_OVER_PI * (v + 0.044715 * v * v * v)))


def transformer_kernel(x_ref, vecs_ref, bqkv_ref, bf1_ref, wqkv_ref, wo3_ref,
                       w1_ref, w2_ref, o_ref, *, num_heads, seq_len):
    """One (bt*N, C) token-row slab per grid step; all weights resident in VMEM."""
    m, c = x_ref.shape
    n = seq_len
    bt = m // n
    dh = c // num_heads
    bf16 = jnp.bfloat16

    def vec(i):
        return vecs_ref[i:i + 1, :]                 # (1, C) static sublane slice

    xf = x_ref[...]                                 # (m, C) f32

    # ---------------- attention branch:  x + Attention(norm1(x)) ----------------
    y = _layernorm(xf, vec(_G1), vec(_B1))          # Transformer.norm1  (f32)
    y = _layernorm(y, vec(_GA), vec(_BA))           # Attention.norm     (f32)
    # Fused qkv projection: 1/sqrt(dh) pre-folded into the q-columns of wqkv and
    # bqkv at pack time; single (1, 3C) bias add.
    qkv = jnp.dot(y.astype(bf16), wqkv_ref[...],
                  preferred_element_type=jnp.float32) + bqkv_ref[...]       # (m, 3C)

    # Split heads into the batch dim of a single 3-D batched einsum:
    #   (m, C) -> [H lane slices of (bt, n, dh)] -> concat axis 0 -> (H*bt, n, dh).
    # Only lane slices + leading-dim reshape/concat (no minor-dim relayout).
    def split_heads(base):
        parts = [qkv[:, base + h * dh: base + (h + 1) * dh].reshape(bt, n, dh)
                 for h in range(num_heads)]
        return jnp.concatenate(parts, axis=0).astype(bf16)

    qh = split_heads(0)            # pre-scaled by 1/sqrt(dh)
    kh = split_heads(c)
    vh = split_heads(2 * c)

    # One batched QK^T and one batched attn@V for all heads.
    dots = jnp.einsum('bqd,bkd->bqk', qh, kh,
                      preferred_element_type=jnp.float32)                   # (H*bt,n,n)
    dots = dots - jnp.max(dots, axis=-1, keepdims=True)
    e = jnp.exp(dots)
    inv_l = pl.reciprocal(jnp.sum(e, axis=-1, keepdims=True), approx=True)  # EUP
    o = jnp.einsum('bqk,bkd->bqd', e.astype(bf16), vh,
                   preferred_element_type=jnp.float32) * inv_l              # (H*bt,n,dh)

    # Output projection: concat(o_h) @ Wo == sum_h o_h @ Wo[h], computed as one
    # head-batched matmul against Wo reshaped to (H, dh, C) plus an H-way add.
    oh = o.reshape(num_heads, m, dh).astype(bf16)                           # (H, m, dh)
    proj = jnp.einsum('hmd,hdc->hmc', oh, wo3_ref[...],
                      preferred_element_type=jnp.float32)                   # (H, m, C)
    x1 = xf + jnp.sum(proj, axis=0) + vec(_BO)

    # ---------------- MLP branch:  x1 + FeedForward(norm2(x1)) ----------------
    z = _layernorm(x1, vec(_G2), vec(_B2))          # Transformer.norm2
    z = _layernorm(z, vec(_GF), vec(_BF))           # FeedForward LayerNorm
    h = jnp.dot(z.astype(bf16), w1_ref[...],
                preferred_element_type=jnp.float32) + bf1_ref[...]          # (m, Hd)
    h = _gelu_tanh(h)
    h = jnp.dot(h.astype(bf16), w2_ref[...],
                preferred_element_type=jnp.float32) + vec(_BF2)             # (m, C)

    o_ref[...] = (x1 + h).astype(o_ref.dtype)


def _pick_batch_tile(B, N, row_target=512):
    """Pick bt dividing B.  Priority: >= 2 grid steps (v7x megacore sharding of the
    'parallel' axis), then the largest divisor with bt*N <= row_target (amortizes
    weight pushes / ~0.35us per-step overhead on the 256-wide v6e/v7x MXUs)."""
    bt = max(1, min(B, max(1, row_target // N)))
    while bt > 1 and (B % bt != 0 or B // bt < 2):
        bt -= 1
    return bt


def _vmem_limit_bytes(bt, N, C, Hd, num_heads):
    m = bt * N
    io_tiles = 2 * 2 * m * C * 4                         # x in + out, double-buffered, f32
    weights = 2 * 2 * (3 * C * C + C * C + 2 * C * Hd)   # bf16 weights, double-buffered
    vectors = 2 * 4 * (_NVEC * C + 3 * C + Hd)
    scratch = (2 * num_heads * bt * N * N * 4            # scores + exp (f32)
               + 6 * m * C * 4                           # qkv / o / x1 / temporaries
               + 2 * m * Hd * 4)                         # MLP activation
    est = io_tiles + weights + vectors + scratch
    return int(min(64 * 1024 * 1024, max(32 * 1024 * 1024, 2 * est)))


def transformer_block(x, params, *, num_heads, batch_tile=None):
    """x: (B, N, C) float32."""
    B, N, C = x.shape
    assert C % num_heads == 0
    dh = C // num_heads
    scale = dh ** (-0.5)
    Hd = params["w1"].shape[1]                  # MLP hidden dim (mlp_ratio * C)
    f32, bf16 = jnp.float32, jnp.bfloat16

    def row(v, width=C):
        return jnp.reshape(v, (1, width)).astype(f32)

    # ---- pack parameters (few arrays -> few BlockSpecs / DMA descriptors) ----
    vecs = jnp.concatenate([
        row(params["g1"]), row(params["b1"]),
        row(params["ga"]), row(params["ba"]),
        row(params["bo"]),
        row(params["g2"]), row(params["b2"]),
        row(params["gf"]), row(params["bf"]),
        row(params["bf2"]),
    ], axis=0)                                                       # (_NVEC, C) f32
    # Fold 1/sqrt(dh) into q-columns of the fused qkv projection at pack time.
    wqkv = jnp.concatenate([params["wq"] * scale, params["wkv"]],
                           axis=1).astype(bf16)                      # (C, 3C)  bf16
    bqkv = jnp.concatenate([row(params["bq"]) * scale,
                            jnp.reshape(params["bkv"], (1, 2 * C)).astype(f32)],
                           axis=1)                                   # (1, 3C)  f32
    wo3 = jnp.reshape(params["wo"], (num_heads, dh, C)).astype(bf16)  # (H, dh, C)
    w1 = params["w1"].astype(bf16)                                   # (C, Hd)
    w2 = params["w2"].astype(bf16)                                   # (Hd, C)
    bf1 = row(params["bf1"], Hd)                                     # (1, Hd)  f32

    bt = _pick_batch_tile(B, N) if batch_tile is None else batch_tile
    assert B % bt == 0
    grid = (B // bt,)

    # Flatten tokens: 2-D (B*N, C) row slabs in and out (free reshapes outside).
    x2 = jnp.reshape(x, (B * N, C))

    const2 = lambda i: (0, 0)
    const3 = lambda i: (0, 0, 0)
    in_specs = [
        pl.BlockSpec((bt * N, C), lambda i: (i, 0)),   # x rows
        pl.BlockSpec(vecs.shape, const2),
        pl.BlockSpec(bqkv.shape, const2),
        pl.BlockSpec(bf1.shape, const2),
        pl.BlockSpec(wqkv.shape, const2),
        pl.BlockSpec(wo3.shape, const3),
        pl.BlockSpec(w1.shape, const2),
        pl.BlockSpec(w2.shape, const2),
    ]
    out_spec = pl.BlockSpec((bt * N, C), lambda i: (i, 0))

    # advisory cost estimate for XLA scheduling
    flops = int(2 * B * N * C * (3 * C + C + 2 * Hd) + 4 * B * N * N * C)
    transcendentals = int(B * num_heads * N * N + B * N * Hd)
    bytes_accessed = int(4 * 2 * B * N * C + 2 * (4 * C * C + 2 * C * Hd)
                         + 4 * (_NVEC * C + 3 * C + Hd))

    kern = functools.partial(transformer_kernel, num_heads=num_heads, seq_len=N)
    out2 = pl.pallas_call(
        kern,
        out_shape=jax.ShapeDtypeStruct((B * N, C), x.dtype),
        grid_spec=pltpu.PrefetchScalarGridSpec(
            num_scalar_prefetch=0,
            grid=grid,
            in_specs=in_specs,
            out_specs=out_spec,
        ),
        compiler_params=pltpu.CompilerParams(
            dimension_semantics=("parallel",),
            vmem_limit_bytes=_vmem_limit_bytes(bt, N, C, Hd, num_heads)),
        cost_estimate=pl.CostEstimate(flops=flops,
                                      transcendentals=transcendentals,
                                      bytes_accessed=bytes_accessed),
    )(x2, vecs, bqkv, bf1, wqkv, wo3, w1, w2)
    return jnp.reshape(out2, (B, N, C))


# ------------------------- pure-JAX reference (for check) -------------------------
def reference(x, p, num_heads):
    B, N, C = x.shape
    dh = C // num_heads
    scale = dh ** (-0.5)
    y = _layernorm(x, p["g1"], p["b1"])
    y = _layernorm(y, p["ga"], p["ba"])
    q = y @ p["wq"] + p["bq"]
    kv = y @ p["wkv"] + p["bkv"]
    k, v = kv[..., :C], kv[..., C:]
    qh = q.reshape(B, N, num_heads, dh).transpose(0, 2, 1, 3)
    kh = k.reshape(B, N, num_heads, dh).transpose(0, 2, 1, 3)
    vh = v.reshape(B, N, num_heads, dh).transpose(0, 2, 1, 3)
    dots = jnp.einsum("bhnd,bhmd->bhnm", qh, kh) * scale
    attn = jax.nn.softmax(dots, axis=-1)
    out = jnp.einsum("bhnm,bhmd->bhnd", attn, vh).transpose(0, 2, 1, 3).reshape(B, N, C)
    out = out @ p["wo"] + p["bo"]
    x1 = x + out
    z = _layernorm(x1, p["g2"], p["b2"])
    z = _layernorm(z, p["gf"], p["bf"])
    h = z @ p["w1"] + p["bf1"]
    h = 0.5 * h * (1.0 + jax.scipy.special.erf(h * _INV_SQRT2))   # exact GELU
    h = h @ p["w2"] + p["bf2"]
    return x1 + h


if __name__ == "__main__":
    # Small config: dim=32, 4 heads, 8x8 spatial grid -> 64 tokens, mlp_ratio=4.
    B, C, H, W = 2, 32, 8, 8
    num_heads = 4
    mlp_ratio = 4
    N = H * W

    key = jax.random.PRNGKey(0)
    keys = jax.random.split(key, 16)

    def nrm(k, shape, s=0.02):
        return jax.random.normal(k, shape, jnp.float32) * s

    params = {
        "g1": 1.0 + nrm(keys[0], (1, C), 0.1),  "b1": nrm(keys[1], (1, C), 0.1),
        "ga": 1.0 + nrm(keys[2], (1, C), 0.1),  "ba": nrm(keys[3], (1, C), 0.1),
        "wq": nrm(keys[4], (C, C)),             "bq": nrm(keys[5], (1, C), 0.01),
        "wkv": nrm(keys[6], (C, 2 * C)),        "bkv": nrm(keys[7], (1, 2 * C), 0.01),
        "wo": nrm(keys[8], (C, C)),             "bo": nrm(keys[9], (1, C), 0.01),
        "g2": 1.0 + nrm(keys[10], (1, C), 0.1), "b2": nrm(keys[11], (1, C), 0.1),
        "gf": 1.0 + nrm(keys[12], (1, C), 0.1), "bf": nrm(keys[13], (1, C), 0.1),
        "w1": nrm(keys[14], (C, mlp_ratio * C)),
        "bf1": jnp.zeros((1, mlp_ratio * C), jnp.float32),
        "w2": nrm(keys[15], (mlp_ratio * C, C)),
        "bf2": jnp.zeros((1, C), jnp.float32),
    }

    x = jax.random.normal(jax.random.PRNGKey(1), (B, N, C), jnp.float32)

    out = transformer_block(x, params, num_heads=num_heads)
    out = jax.block_until_ready(out)

    ref = reference(x, params, num_heads)
    # Tolerance loosened slightly vs an all-f32 kernel: bf16 MXU operands,
    # tanh-approx GELU, and approx-reciprocal softmax normalization (review
    # correctness notes).  Observed error is O(1e-3); bound is 2e-2.
    np.testing.assert_allclose(np.asarray(out), np.asarray(ref), atol=2e-2, rtol=2e-2)

    print("KERNEL_OK")
</pallas_src>

<mosaic_0001>
module attributes {stable_mosaic.version = 11 : i64} {
  func.func @transformer_kernel(%arg0: i32, %arg1: memref<64x32xf32, #tpu.memory_space<vmem>>, %arg2: memref<10x32xf32, #tpu.memory_space<vmem>>, %arg3: memref<1x96xf32, #tpu.memory_space<vmem>>, %arg4: memref<1x128xf32, #tpu.memory_space<vmem>>, %arg5: memref<32x96xbf16, #tpu.memory_space<vmem>>, %arg6: memref<4x8x32xbf16, #tpu.memory_space<vmem>>, %arg7: memref<32x128xbf16, #tpu.memory_space<vmem>>, %arg8: memref<128x32xbf16, #tpu.memory_space<vmem>>, %arg9: memref<64x32xf32, #tpu.memory_space<vmem>>) attributes {dimension_semantics = [#tpu.dimension_semantics<parallel>], iteration_bounds = array<i64: 2>, scalar_prefetch = 0 : i64, scratch_operands = 0 : i64, tpu.core_type = #tpu.core_type<tc>, window_params = [{transform_indices = @transform_0, window_bounds = array<i64: 64, 32>}, {pipeline_mode = #tpu.pipeline_mode<synchronous>, transform_indices = @transform_1, window_bounds = array<i64: 10, 32>}, {pipeline_mode = #tpu.pipeline_mode<synchronous>, transform_indices = @transform_2, window_bounds = array<i64: 1, 96>}, {pipeline_mode = #tpu.pipeline_mode<synchronous>, transform_indices = @transform_3, window_bounds = array<i64: 1, 128>}, {pipeline_mode = #tpu.pipeline_mode<synchronous>, transform_indices = @transform_4, window_bounds = array<i64: 32, 96>}, {pipeline_mode = #tpu.pipeline_mode<synchronous>, transform_indices = @transform_5, window_bounds = array<i64: 4, 8, 32>}, {pipeline_mode = #tpu.pipeline_mode<synchronous>, transform_indices = @transform_6, window_bounds = array<i64: 32, 128>}, {pipeline_mode = #tpu.pipeline_mode<synchronous>, transform_indices = @transform_7, window_bounds = array<i64: 128, 32>}, {transform_indices = @transform_8, window_bounds = array<i64: 64, 32>}]} {
    %c0 = arith.constant 0 : index
    %c0_0 = arith.constant 0 : index
    %0 = vector.load %arg1[%c0, %c0_0] : memref<64x32xf32, #tpu.memory_space<vmem>>, vector<64x32xf32>
    %c0_1 = arith.constant 0 : index
    %c0_2 = arith.constant 0 : index
    %1 = vector.load %arg2[%c0_1, %c0_2] : memref<10x32xf32, #tpu.memory_space<vmem>>, vector<1x32xf32>
    %c1 = arith.constant 1 : index
    %c0_3 = arith.constant 0 : index
    %2 = vector.load %arg2[%c1, %c0_3] : memref<10x32xf32, #tpu.memory_space<vmem>>, vector<1x32xf32>
    %cst = arith.constant dense<0.000000e+00> : vector<64xf32>
    %3 = vector.multi_reduction <add>, %0, %cst [1] : vector<64x32xf32> to vector<64xf32>
    %4 = vector.shape_cast %3 : vector<64xf32> to vector<64x1xf32>
    %cst_4 = arith.constant 3.200000e+01 : f32
    %5 = vector.broadcast %cst_4 : f32 to vector<64x1xf32>
    %6 = arith.divf %4, %5 : vector<64x1xf32>
    %7 = vector.broadcast %6 : vector<64x1xf32> to vector<64x32xf32>
    %8 = arith.subf %0, %7 : vector<64x32xf32>
    %9 = arith.mulf %8, %8 : vector<64x32xf32>
    %cst_5 = arith.constant dense<0.000000e+00> : vector<64xf32>
    %10 = vector.multi_reduction <add>, %9, %cst_5 [1] : vector<64x32xf32> to vector<64xf32>
    %11 = vector.shape_cast %10 : vector<64xf32> to vector<64x1xf32>
    %cst_6 = arith.constant 3.200000e+01 : f32
    %12 = vector.broadcast %cst_6 : f32 to vector<64x1xf32>
    %13 = arith.divf %11, %12 : vector<64x1xf32>
    %14 = vector.broadcast %6 : vector<64x1xf32> to vector<64x32xf32>
    %15 = arith.subf %0, %14 : vector<64x32xf32>
    %cst_7 = arith.constant 9.99999997E-7 : f32
    %16 = vector.broadcast %cst_7 : f32 to vector<64x1xf32>
    %17 = arith.addf %13, %16 : vector<64x1xf32>
    %18 = math.rsqrt %17 : vector<64x1xf32>
    %19 = vector.broadcast %18 : vector<64x1xf32> to vector<64x32xf32>
    %20 = arith.mulf %15, %19 : vector<64x32xf32>
    %21 = vector.broadcast %1 : vector<1x32xf32> to vector<64x32xf32>
    %22 = arith.mulf %20, %21 : vector<64x32xf32>
    %23 = vector.broadcast %2 : vector<1x32xf32> to vector<64x32xf32>
    %24 = arith.addf %22, %23 : vector<64x32xf32>
    %c2 = arith.constant 2 : index
    %c0_8 = arith.constant 0 : index
    %25 = vector.load %arg2[%c2, %c0_8] : memref<10x32xf32, #tpu.memory_space<vmem>>, vector<1x32xf32>
    %c3 = arith.constant 3 : index
    %c0_9 = arith.constant 0 : index
    %26 = vector.load %arg2[%c3, %c0_9] : memref<10x32xf32, #tpu.memory_space<vmem>>, vector<1x32xf32>
    %cst_10 = arith.constant dense<0.000000e+00> : vector<64xf32>
    %27 = vector.multi_reduction <add>, %24, %cst_10 [1] : vector<64x32xf32> to vector<64xf32>
    %28 = vector.shape_cast %27 : vector<64xf32> to vector<64x1xf32>
    %cst_11 = arith.constant 3.200000e+01 : f32
    %29 = vector.broadcast %cst_11 : f32 to vector<64x1xf32>
    %30 = arith.divf %28, %29 : vector<64x1xf32>
    %31 = vector.broadcast %30 : vector<64x1xf32> to vector<64x32xf32>
    %32 = arith.subf %24, %31 : vector<64x32xf32>
    %33 = arith.mulf %32, %32 : vector<64x32xf32>
    %cst_12 = arith.constant dense<0.000000e+00> : vector<64xf32>
    %34 = vector.multi_reduction <add>, %33, %cst_12 [1] : vector<64x32xf32> to vector<64xf32>
    %35 = vector.shape_cast %34 : vector<64xf32> to vector<64x1xf32>
    %cst_13 = arith.constant 3.200000e+01 : f32
    %36 = vector.broadcast %cst_13 : f32 to vector<64x1xf32>
    %37 = arith.divf %35, %36 : vector<64x1xf32>
    %38 = vector.broadcast %30 : vector<64x1xf32> to vector<64x32xf32>
    %39 = arith.subf %24, %38 : vector<64x32xf32>
    %cst_14 = arith.constant 9.99999997E-7 : f32
    %40 = vector.broadcast %cst_14 : f32 to vector<64x1xf32>
    %41 = arith.addf %37, %40 : vector<64x1xf32>
    %42 = math.rsqrt %41 : vector<64x1xf32>
    %43 = vector.broadcast %42 : vector<64x1xf32> to vector<64x32xf32>
    %44 = arith.mulf %39, %43 : vector<64x32xf32>
    %45 = vector.broadcast %25 : vector<1x32xf32> to vector<64x32xf32>
    %46 = arith.mulf %44, %45 : vector<64x32xf32>
    %47 = vector.broadcast %26 : vector<1x32xf32> to vector<64x32xf32>
    %48 = arith.addf %46, %47 : vector<64x32xf32>
    %49 = arith.truncf %48 : vector<64x32xf32> to vector<64x32xbf16>
    %c0_15 = arith.constant 0 : index
    %c0_16 = arith.constant 0 : index
    %50 = vector.load %arg5[%c0_15, %c0_16] : memref<32x96xbf16, #tpu.memory_space<vmem>>, vector<32x96xbf16>
    %cst_17 = arith.constant dense<0.000000e+00> : vector<64x96xf32>
    %51 = tpu.matmul %49, %50, %cst_17 {dimension_numbers = #tpu.dot_dimension_numbers<[1], [0], [0], [1], [0, 0, 1, 1], [], []>} : vector<64x32xbf16>, vector<32x96xbf16>, vector<64x96xf32> -> vector<64x96xf32>
    %c0_18 = arith.constant 0 : index
    %c0_19 = arith.constant 0 : index
    %52 = vector.load %arg3[%c0_18, %c0_19] : memref<1x96xf32, #tpu.memory_space<vmem>>, vector<1x96xf32>
    %53 = vector.broadcast %52 : vector<1x96xf32> to vector<64x96xf32>
    %54 = arith.addf %51, %53 : vector<64x96xf32>
    %55 = vector.extract_strided_slice %54 {offsets = [0, 0], sizes = [64, 8], strides = [1, 1]} : vector<64x96xf32> to vector<64x8xf32>
    %56 = vector.shape_cast %55 : vector<64x8xf32> to vector<1x64x8xf32>
    %57 = vector.extract_strided_slice %54 {offsets = [0, 8], sizes = [64, 8], strides = [1, 1]} : vector<64x96xf32> to vector<64x8xf32>
    %58 = vector.shape_cast %57 : vector<64x8xf32> to vector<1x64x8xf32>
    %59 = vector.extract_strided_slice %54 {offsets = [0, 16], sizes = [64, 8], strides = [1, 1]} : vector<64x96xf32> to vector<64x8xf32>
    %60 = vector.shape_cast %59 : vector<64x8xf32> to vector<1x64x8xf32>
    %61 = vector.extract_strided_slice %54 {offsets = [0, 24], sizes = [64, 8], strides = [1, 1]} : vector<64x96xf32> to vector<64x8xf32>
    %62 = vector.shape_cast %61 : vector<64x8xf32> to vector<1x64x8xf32>
    %63 = tpu.concatenate %56, %58, %60, %62 in 0 : vector<1x64x8xf32>, vector<1x64x8xf32>, vector<1x64x8xf32>, vector<1x64x8xf32> -> vector<4x64x8xf32>
    %64 = arith.truncf %63 : vector<4x64x8xf32> to vector<4x64x8xbf16>
    %65 = vector.extract_strided_slice %54 {offsets = [0, 32], sizes = [64, 8], strides = [1, 1]} : vector<64x96xf32> to vector<64x8xf32>
    %66 = vector.shape_cast %65 : vector<64x8xf32> to vector<1x64x8xf32>
    %67 = vector.extract_strided_slice %54 {offsets = [0, 40], sizes = [64, 8], strides = [1, 1]} : vector<64x96xf32> to vector<64x8xf32>
    %68 = vector.shape_cast %67 : vector<64x8xf32> to vector<1x64x8xf32>
    %69 = vector.extract_strided_slice %54 {offsets = [0, 48], sizes = [64, 8], strides = [1, 1]} : vector<64x96xf32> to vector<64x8xf32>
    %70 = vector.shape_cast %69 : vector<64x8xf32> to vector<1x64x8xf32>
    %71 = vector.extract_strided_slice %54 {offsets = [0, 56], sizes = [64, 8], strides = [1, 1]} : vector<64x96xf32> to vector<64x8xf32>
    %72 = vector.shape_cast %71 : vector<64x8xf32> to vector<1x64x8xf32>
    %73 = tpu.concatenate %66, %68, %70, %72 in 0 : vector<1x64x8xf32>, vector<1x64x8xf32>, vector<1x64x8xf32>, vector<1x64x8xf32> -> vector<4x64x8xf32>
    %74 = arith.truncf %73 : vector<4x64x8xf32> to vector<4x64x8xbf16>
    %75 = vector.extract_strided_slice %54 {offsets = [0, 64], sizes = [64, 8], strides = [1, 1]} : vector<64x96xf32> to vector<64x8xf32>
    %76 = vector.shape_cast %75 : vector<64x8xf32> to vector<1x64x8xf32>
    %77 = vector.extract_strided_slice %54 {offsets = [0, 72], sizes = [64, 8], strides = [1, 1]} : vector<64x96xf32> to vector<64x8xf32>
    %78 = vector.shape_cast %77 : vector<64x8xf32> to vector<1x64x8xf32>
    %79 = vector.extract_strided_slice %54 {offsets = [0, 80], sizes = [64, 8], strides = [1, 1]} : vector<64x96xf32> to vector<64x8xf32>
    %80 = vector.shape_cast %79 : vector<64x8xf32> to vector<1x64x8xf32>
    %81 = vector.extract_strided_slice %54 {offsets = [0, 88], sizes = [64, 8], strides = [1, 1]} : vector<64x96xf32> to vector<64x8xf32>
    %82 = vector.shape_cast %81 : vector<64x8xf32> to vector<1x64x8xf32>
    %83 = tpu.concatenate %76, %78, %80, %82 in 0 : vector<1x64x8xf32>, vector<1x64x8xf32>, vector<1x64x8xf32>, vector<1x64x8xf32> -> vector<4x64x8xf32>
    %84 = arith.truncf %83 : vector<4x64x8xf32> to vector<4x64x8xbf16>
    "tpu.trace_start"() <{level = 10 : i32, message = "bqd,bkd->bqk"}> : () -> ()
    %cst_20 = arith.constant dense<0.000000e+00> : vector<4x64x64xf32>
    %85 = tpu.matmul %64, %74, %cst_20 {dimension_numbers = #tpu.dot_dimension_numbers<[2], [2], [1], [1], [0, 0, 0, 1, 1, 1], [0], [0]>} : vector<4x64x8xbf16>, vector<4x64x8xbf16>, vector<4x64x64xf32> -> vector<4x64x64xf32>
    "tpu.trace_stop"() : () -> ()
    %cst_21 = arith.constant dense<0xFF800000> : vector<4x64xf32>
    %86 = vector.multi_reduction <maximumf>, %85, %cst_21 [2] : vector<4x64x64xf32> to vector<4x64xf32>
    %87 = vector.shape_cast %86 : vector<4x64xf32> to vector<4x64x1xf32>
    %88 = vector.broadcast %87 : vector<4x64x1xf32> to vector<4x64x64xf32>
    %89 = arith.subf %85, %88 : vector<4x64x64xf32>
    %90 = math.exp %89 : vector<4x64x64xf32>
    %cst_22 = arith.constant dense<0.000000e+00> : vector<4x64xf32>
    %91 = vector.multi_reduction <add>, %90, %cst_22 [2] : vector<4x64x64xf32> to vector<4x64xf32>
    %92 = vector.shape_cast %91 : vector<4x64xf32> to vector<4x64x1xf32>
    %93 = tpu.reciprocal %92 {approx = true} : vector<4x64x1xf32> -> vector<4x64x1xf32>
    %94 = arith.truncf %90 : vector<4x64x64xf32> to vector<4x64x64xbf16>
    "tpu.trace_start"() <{level = 10 : i32, message = "bqk,bkd->bqd"}> : () -> ()
    %cst_23 = arith.constant dense<0.000000e+00> : vector<4x64x8xf32>
    %95 = tpu.matmul %94, %84, %cst_23 {dimension_numbers = #tpu.dot_dimension_numbers<[2], [1], [1], [2], [0, 0, 0, 1, 1, 2], [0], [0]>} : vector<4x64x64xbf16>, vector<4x64x8xbf16>, vector<4x64x8xf32> -> vector<4x64x8xf32>
    "tpu.trace_stop"() : () -> ()
    %96 = vector.broadcast %93 : vector<4x64x1xf32> to vector<4x64x8xf32>
    %97 = arith.mulf %95, %96 : vector<4x64x8xf32>
    %98 = arith.truncf %97 : vector<4x64x8xf32> to vector<4x64x8xbf16>
    %c0_24 = arith.constant 0 : index
    %c0_25 = arith.constant 0 : index
    %c0_26 = arith.constant 0 : index
    %99 = vector.load %arg6[%c0_24, %c0_25, %c0_26] : memref<4x8x32xbf16, #tpu.memory_space<vmem>>, vector<4x8x32xbf16>
    "tpu.trace_start"() <{level = 10 : i32, message = "hmd,hdc->hmc"}> : () -> ()
    %cst_27 = arith.constant dense<0.000000e+00> : vector<4x64x32xf32>
    %100 = tpu.matmul %98, %99, %cst_27 {dimension_numbers = #tpu.dot_dimension_numbers<[2], [1], [1], [2], [0, 0, 0, 1, 1, 2], [0], [0]>} : vector<4x64x8xbf16>, vector<4x8x32xbf16>, vector<4x64x32xf32> -> vector<4x64x32xf32>
    "tpu.trace_stop"() : () -> ()
    %cst_28 = arith.constant dense<0.000000e+00> : vector<64x32xf32>
    %101 = vector.multi_reduction <add>, %100, %cst_28 [0] : vector<4x64x32xf32> to vector<64x32xf32>
    %102 = arith.addf %0, %101 : vector<64x32xf32>
    %c4 = arith.constant 4 : index
    %c0_29 = arith.constant 0 : index
    %103 = vector.load %arg2[%c4, %c0_29] : memref<10x32xf32, #tpu.memory_space<vmem>>, vector<1x32xf32>
    %104 = vector.broadcast %103 : vector<1x32xf32> to vector<64x32xf32>
    %105 = arith.addf %102, %104 : vector<64x32xf32>
    %c5 = arith.constant 5 : index
    %c0_30 = arith.constant 0 : index
    %106 = vector.load %arg2[%c5, %c0_30] : memref<10x32xf32, #tpu.memory_space<vmem>>, vector<1x32xf32>
    %c6 = arith.constant 6 : index
    %c0_31 = arith.constant 0 : index
    %107 = vector.load %arg2[%c6, %c0_31] : memref<10x32xf32, #tpu.memory_space<vmem>>, vector<1x32xf32>
    %cst_32 = arith.constant dense<0.000000e+00> : vector<64xf32>
    %108 = vector.multi_reduction <add>, %105, %cst_32 [1] : vector<64x32xf32> to vector<64xf32>
    %109 = vector.shape_cast %108 : vector<64xf32> to vector<64x1xf32>
    %cst_33 = arith.constant 3.200000e+01 : f32
    %110 = vector.broadcast %cst_33 : f32 to vector<64x1xf32>
    %111 = arith.divf %109, %110 : vector<64x1xf32>
    %112 = vector.broadcast %111 : vector<64x1xf32> to vector<64x32xf32>
    %113 = arith.subf %105, %112 : vector<64x32xf32>
    %114 = arith.mulf %113, %113 : vector<64x32xf32>
    %cst_34 = arith.constant dense<0.000000e+00> : vector<64xf32>
    %115 = vector.multi_reduction <add>, %114, %cst_34 [1] : vector<64x32xf32> to vector<64xf32>
    %116 = vector.shape_cast %115 : vector<64xf32> to vector<64x1xf32>
    %cst_35 = arith.constant 3.200000e+01 : f32
    %117 = vector.broadcast %cst_35 : f32 to vector<64x1xf32>
    %118 = arith.divf %116, %117 : vector<64x1xf32>
    %119 = vector.broadcast %111 : vector<64x1xf32> to vector<64x32xf32>
    %120 = arith.subf %105, %119 : vector<64x32xf32>
    %cst_36 = arith.constant 9.99999997E-7 : f32
    %121 = vector.broadcast %cst_36 : f32 to vector<64x1xf32>
    %122 = arith.addf %118, %121 : vector<64x1xf32>
    %123 = math.rsqrt %122 : vector<64x1xf32>
    %124 = vector.broadcast %123 : vector<64x1xf32> to vector<64x32xf32>
    %125 = arith.mulf %120, %124 : vector<64x32xf32>
    %126 = vector.broadcast %106 : vector<1x32xf32> to vector<64x32xf32>
    %127 = arith.mulf %125, %126 : vector<64x32xf32>
    %128 = vector.broadcast %107 : vector<1x32xf32> to vector<64x32xf32>
    %129 = arith.addf %127, %128 : vector<64x32xf32>
    %c7 = arith.constant 7 : index
    %c0_37 = arith.constant 0 : index
    %130 = vector.load %arg2[%c7, %c0_37] : memref<10x32xf32, #tpu.memory_space<vmem>>, vector<1x32xf32>
    %c8 = arith.constant 8 : index
    %c0_38 = arith.constant 0 : index
    %131 = vector.load %arg2[%c8, %c0_38] : memref<10x32xf32, #tpu.memory_space<vmem>>, vector<1x32xf32>
    %cst_39 = arith.constant dense<0.000000e+00> : vector<64xf32>
    %132 = vector.multi_reduction <add>, %129, %cst_39 [1] : vector<64x32xf32> to vector<64xf32>
    %133 = vector.shape_cast %132 : vector<64xf32> to vector<64x1xf32>
    %cst_40 = arith.constant 3.200000e+01 : f32
    %134 = vector.broadcast %cst_40 : f32 to vector<64x1xf32>
    %135 = arith.divf %133, %134 : vector<64x1xf32>
    %136 = vector.broadcast %135 : vector<64x1xf32> to vector<64x32xf32>
    %137 = arith.subf %129, %136 : vector<64x32xf32>
    %138 = arith.mulf %137, %137 : vector<64x32xf32>
    %cst_41 = arith.constant dense<0.000000e+00> : vector<64xf32>
    %139 = vector.multi_reduction <add>, %138, %cst_41 [1] : vector<64x32xf32> to vector<64xf32>
    %140 = vector.shape_cast %139 : vector<64xf32> to vector<64x1xf32>
    %cst_42 = arith.constant 3.200000e+01 : f32
    %141 = vector.broadcast %cst_42 : f32 to vector<64x1xf32>
    %142 = arith.divf %140, %141 : vector<64x1xf32>
    %143 = vector.broadcast %135 : vector<64x1xf32> to vector<64x32xf32>
    %144 = arith.subf %129, %143 : vector<64x32xf32>
    %cst_43 = arith.constant 9.99999997E-7 : f32
    %145 = vector.broadcast %cst_43 : f32 to vector<64x1xf32>
    %146 = arith.addf %142, %145 : vector<64x1xf32>
    %147 = math.rsqrt %146 : vector<64x1xf32>
    %148 = vector.broadcast %147 : vector<64x1xf32> to vector<64x32xf32>
    %149 = arith.mulf %144, %148 : vector<64x32xf32>
    %150 = vector.broadcast %130 : vector<1x32xf32> to vector<64x32xf32>
    %151 = arith.mulf %149, %150 : vector<64x32xf32>
    %152 = vector.broadcast %131 : vector<1x32xf32> to vector<64x32xf32>
    %153 = arith.addf %151, %152 : vector<64x32xf32>
    %154 = arith.truncf %153 : vector<64x32xf32> to vector<64x32xbf16>
    %c0_44 = arith.constant 0 : index
    %c0_45 = arith.constant 0 : index
    %155 = vector.load %arg7[%c0_44, %c0_45] : memref<32x128xbf16, #tpu.memory_space<vmem>>, vector<32x128xbf16>
    %cst_46 = arith.constant dense<0.000000e+00> : vector<64x128xf32>
    %156 = tpu.matmul %154, %155, %cst_46 {dimension_numbers = #tpu.dot_dimension_numbers<[1], [0], [0], [1], [0, 0, 1, 1], [], []>} : vector<64x32xbf16>, vector<32x128xbf16>, vector<64x128xf32> -> vector<64x128xf32>
    %c0_47 = arith.constant 0 : index
    %c0_48 = arith.constant 0 : index
    %157 = vector.load %arg4[%c0_47, %c0_48] : memref<1x128xf32, #tpu.memory_space<vmem>>, vector<1x128xf32>
    %158 = vector.broadcast %157 : vector<1x128xf32> to vector<64x128xf32>
    %159 = arith.addf %156, %158 : vector<64x128xf32>
    %cst_49 = arith.constant 5.000000e-01 : f32
    %160 = vector.broadcast %cst_49 : f32 to vector<64x128xf32>
    %161 = arith.mulf %160, %159 : vector<64x128xf32>
    %cst_50 = arith.constant 4.471500e-02 : f32
    %162 = vector.broadcast %cst_50 : f32 to vector<64x128xf32>
    %163 = arith.mulf %162, %159 : vector<64x128xf32>
    %164 = arith.mulf %163, %159 : vector<64x128xf32>
    %165 = arith.mulf %164, %159 : vector<64x128xf32>
    %166 = arith.addf %159, %165 : vector<64x128xf32>
    %cst_51 = arith.constant 0.797884583 : f32
    %167 = vector.broadcast %cst_51 : f32 to vector<64x128xf32>
    %168 = arith.mulf %167, %166 : vector<64x128xf32>
    %169 = math.tanh %168 : vector<64x128xf32>
    %cst_52 = arith.constant 1.000000e+00 : f32
    %170 = vector.broadcast %cst_52 : f32 to vector<64x128xf32>
    %171 = arith.addf %170, %169 : vector<64x128xf32>
    %172 = arith.mulf %161, %171 : vector<64x128xf32>
    %173 = arith.truncf %172 : vector<64x128xf32> to vector<64x128xbf16>
    %c0_53 = arith.constant 0 : index
    %c0_54 = arith.constant 0 : index
    %174 = vector.load %arg8[%c0_53, %c0_54] : memref<128x32xbf16, #tpu.memory_space<vmem>>, vector<128x32xbf16>
    %cst_55 = arith.constant dense<0.000000e+00> : vector<64x32xf32>
    %175 = tpu.matmul %173, %174, %cst_55 {dimension_numbers = #tpu.dot_dimension_numbers<[1], [0], [0], [1], [0, 0, 1, 1], [], []>} : vector<64x128xbf16>, vector<128x32xbf16>, vector<64x32xf32> -> vector<64x32xf32>
    %c9 = arith.constant 9 : index
    %c0_56 = arith.constant 0 : index
    %176 = vector.load %arg2[%c9, %c0_56] : memref<10x32xf32, #tpu.memory_space<vmem>>, vector<1x32xf32>
    %177 = vector.broadcast %176 : vector<1x32xf32> to vector<64x32xf32>
    %178 = arith.addf %175, %177 : vector<64x32xf32>
    %179 = arith.addf %105, %178 : vector<64x32xf32>
    %c0_57 = arith.constant 0 : index
    %c0_58 = arith.constant 0 : index
    %180 = vector.load %arg9[%c0_57, %c0_58] : memref<64x32xf32, #tpu.memory_space<vmem>>, vector<64x32xf32>
    tpu.vector_store %arg9[%c0_57, %c0_58], %179 {strides = array<i32>} : memref<64x32xf32, #tpu.memory_space<vmem>>, vector<64x32xf32>,
    return
  }
  func.func @transform_0(%arg0: i32) -> (i32, i32) {
    %c0_i32 = arith.constant 0 : i32
    %c0_i32_0 = arith.constant 0 : i32
    return %arg0, %c0_i32 : i32, i32
  }
  func.func @transform_1(%arg0: i32) -> (i32, i32) {
    %c0_i32 = arith.constant 0 : i32
    %c0_i32_0 = arith.constant 0 : i32
    %c0_i32_1 = arith.constant 0 : i32
    return %c0_i32, %c0_i32_0 : i32, i32
  }
  func.func @transform_2(%arg0: i32) -> (i32, i32) {
    %c0_i32 = arith.constant 0 : i32
    %c0_i32_0 = arith.constant 0 : i32
    %c0_i32_1 = arith.constant 0 : i32
    return %c0_i32, %c0_i32_0 : i32, i32
  }
  func.func @transform_3(%arg0: i32) -> (i32, i32) {
    %c0_i32 = arith.constant 0 : i32
    %c0_i32_0 = arith.constant 0 : i32
    %c0_i32_1 = arith.constant 0 : i32
    return %c0_i32, %c0_i32_0 : i32, i32
  }
  func.func @transform_4(%arg0: i32) -> (i32, i32) {
    %c0_i32 = arith.constant 0 : i32
    %c0_i32_0 = arith.constant 0 : i32
    %c0_i32_1 = arith.constant 0 : i32
    return %c0_i32, %c0_i32_0 : i32, i32
  }
  func.func @transform_5(%arg0: i32) -> (i32, i32, i32) {
    %c0_i32 = arith.constant 0 : i32
    %c0_i32_0 = arith.constant 0 : i32
    %c0_i32_1 = arith.constant 0 : i32
    %c0_i32_2 = arith.constant 0 : i32
    return %c0_i32, %c0_i32_0, %c0_i32_1 : i32, i32, i32
  }
  func.func @transform_6(%arg0: i32) -> (i32, i32) {
    %c0_i32 = arith.constant 0 : i32
    %c0_i32_0 = arith.constant 0 : i32
    %c0_i32_1 = arith.constant 0 : i32
    return %c0_i32, %c0_i32_0 : i32, i32
  }
  func.func @transform_7(%arg0: i32) -> (i32, i32) {
    %c0_i32 = arith.constant 0 : i32
    %c0_i32_0 = arith.constant 0 : i32
    %c0_i32_1 = arith.constant 0 : i32
    return %c0_i32, %c0_i32_0 : i32, i32
  }
  func.func @transform_8(%arg0: i32) -> (i32, i32) {
    %c0_i32 = arith.constant 0 : i32
    %c0_i32_0 = arith.constant 0 : i32
    return %arg0, %c0_i32 : i32, i32
  }
}

</mosaic_0001>

<bundles_post_ra>
// kernel: tpu_custom_call.1
= control target key start
LH: loop header
LB: loop body
LE: loop exit
PB: predicated region body
PF: predicated region fallthrough
CT: control target
= control target key end

     0   :  { %s3768_s27 = smov 0   ;;  %s4678_s0 = inlined_call_operand.vmem [shape: f32[128,32], index: 0, kind: input, shape index: {}]   ;;  %s4679_s1 = inlined_call_operand.vmem [shape: f32[10,32], index: 1, kind: input, shape index: {}]   ;;  %s4680_s2 = inlined_call_operand.vmem [shape: f32[1,96], index: 2, kind: input, shape index: {}]   ;;  %s4681_s3 = inlined_call_operand.vmem [shape: f32[1,128], index: 3, kind: input, shape index: {}]   ;;  %s4682_s4 = inlined_call_operand.vmem [shape: bf16[32,96], index: 4, kind: input, shape index: {}]   ;;  %s4683_s5 = inlined_call_operand.vmem [shape: bf16[4,8,32], index: 5, kind: input, shape index: {}]   ;;  %s4684_s6 = inlined_call_operand.vmem [shape: bf16[32,128], index: 6, kind: input, shape index: {}]   ;;  %s4685_s7 = inlined_call_operand.vmem [shape: bf16[128,32], index: 7, kind: input, shape index: {}]   ;;  %s4686_s8 = inlined_call_operand.vmem [shape: f32[128,32], index: 8, kind: output, shape index: {}]  }
   0x1 LB: > { %s2974_s28 = sadd.s32 4294967295, %s3716_s27   ;;  %p2978_p0 = scmp.ge.s32.totalorder %s3716_s27, 1  ;;  %s3716_s27 = sphi %s3768_s27, %s18_s27  }
   0x2   : > { %p263_p1 = scmp.lt.s32.totalorder %s3716_s27, 3 }
   0x4   : > { %p264_p2 = pnand %p2978_p0, %p263_p1 }
   0x5   : > { %s2979_s29 = sshll.u32 (!%p264_p2), %s2974_s28, 3  ;;  %s3718_s26 = smov (!%p264_p2), 120  }
   0x6   : > { %267 = sbr.rel (%p264_p2) target bundleno = 2997 (0xbb5), region = 52  ;;  %p298_p3 = scmp.lt.s32.totalorder (!%p264_p2), %s2979_s29, 15 }
   0x7   : > { %s3719_s28 = smov (!%p264_p2), 112   ;;  %s3720_s9 = smov (!%p264_p2), 104  }
   0x8   : > { %s3721_s10 = smov (!%p264_p2), 96   ;;  %s3722_s12 = smov (!%p264_p2), 64  }
   0xb   : > { %s4688_s29 = smov (!%p298_p3, %s2979_s29), 15  ;;  %vm320_vm0 = vcmask 261120   ;;  %vm792_vm1 = vcmask 64512   ;;  %vm1185_vm2 = vcmask 523264   ;;  %vm1942_vm3 = vcmask 1043456  }
   0xc   : > { %s2980_s30 = sshll.u32 %s4688_s29, 3 }
   0xd   : > { %s3784_s11 = scalar_lea.vmem %s4678_s0, %s2980_s30  ;;  %s307_s19 = scalar_lea.vmem %s4686_s8, %s2980_s30 }
   0xe   : > { %v310_v0 = vld [vmem:[%s3784_s11] sm:$0xff]  ;;  %v312_v1 = vld [vmem:[%s3784_s11 + $0x10] sm:$0xff]  ;;  %v311_v2 = vld [vmem:[%s3784_s11 + $0x8] sm:$0xff] }
   0xf   : > { %v321_v3 = vsel %vm320_vm0, %v310_v0, 0.0  ;;  %v327_v4 = vsel %vm320_vm0, %v312_v1, 0.0  ;;  %v313_v5 = vld [vmem:[%s3784_s11 + $0x18] sm:$0xff]  ;;  %v324_v6 = vsel %vm320_vm0, %v311_v2, 0.0  ;;  %v314_v7 = vld [vmem:[%s3784_s11 + $0x20] sm:$0xff]  ;;  %v315_v9 = vld [vmem:[%s3784_s11 + $0x28] sm:$0xff] }
  0x10   : > { %322 = vadd.xlane.f32.xlu0 %v321_v3  ;;  %328 = vadd.xlane.f32.xlu1 %v327_v4  ;;  %v330_v8 = vsel %vm320_vm0, %v313_v5, 0.0  ;;  %v333_v10 = vsel %vm320_vm0, %v314_v7, 0.0  ;;  %v336_v11 = vsel %vm320_vm0, %v315_v9, 0.0  ;;  %v316_v12 = vld [vmem:[%s3784_s11 + $0x30] sm:$0xff]  ;;  %v317_v13 = vld [vmem:[%s3784_s11 + $0x38] sm:$0xff] }
  0x11   : > { %v339_v14 = vsel %vm320_vm0, %v316_v12, 0.0  ;;  %v342_v15 = vsel %vm320_vm0, %v317_v13, 0.0 }
  0x14   : > { %325 = vadd.xlane.f32.xlu0 %v324_v6  ;;  %331 = vadd.xlane.f32.xlu1 %v330_v8 }
  0x18   : > { %334 = vadd.xlane.f32.xlu0 %v333_v10  ;;  %337 = vadd.xlane.f32.xlu1 %v336_v11 }
  0x1c   : > { %340 = vadd.xlane.f32.xlu0 %v339_v14  ;;  %343 = vadd.xlane.f32.xlu1 %v342_v15 }
  0x99   : > { %v323_v16 = vpop.xlane.xlu0 %322  ;;  %v329_v17 = vpop.xlane.xlu1 %328 }
  0x9a   : > { %v346_v18 = vmul.f32 0.03125, %v323_v16  ;;  %v348_v19 = vmul.f32 0.03125, %v329_v17  ;;  %v2983_v16 = vld [vmem:[%s4679_s1] ss:$0 sm:$0xff] }
  0x9c   : > { %v3802_v20 = vsub.f32 %v310_v0, %v346_v18  ;;  %v3804_v21 = vsub.f32 %v312_v1, %v348_v19  ;;  %v2984_v19 = vld [vmem:[%s4679_s1 + $0x1] ss:$0 sm:$0xff] }
  0x9d   : > { %v326_v22 = vpop.xlane.xlu0 %325  ;;  %v332_v23 = vpop.xlane.xlu1 %331 }
  0x9e   : > { %v347_v24 = vmul.f32 0.03125, %v326_v22  ;;  %v349_v25 = vmul.f32 0.03125, %v332_v23  ;;  %v362_v26 = vmul.f32 %v3802_v20, %v3802_v20  ;;  %v364_v27 = vmul.f32 %v3804_v21, %v3804_v21 }
  0xa0   : > { %v3810_v28 = vsub.f32 %v311_v2, %v347_v24  ;;  %v3812_v29 = vsub.f32 %v313_v5, %v349_v25  ;;  %v370_v30 = vsel %vm320_vm0, %v362_v26, 0.0  ;;  %v376_v33 = vsel %vm320_vm0, %v364_v27, 0.0 }
  0xa1   : > { %371 = vadd.xlane.f32.xlu0 %v370_v30  ;;  %v335_v31 = vpop.xlane.xlu0 %334  ;;  %v338_v32 = vpop.xlane.xlu1 %337 }
  0xa2   : > { %v350_v34 = vmul.f32 0.03125, %v335_v31  ;;  %v351_v35 = vmul.f32 0.03125, %v338_v32  ;;  %v363_v36 = vmul.f32 %v3810_v28, %v3810_v28  ;;  %v365_v37 = vmul.f32 %v3812_v29, %v3812_v29 }
  0xa4   : > { %v3820_v38 = vsub.f32 %v314_v7, %v350_v34  ;;  %v3822_v39 = vsub.f32 %v315_v9, %v351_v35  ;;  %v373_v40 = vsel %vm320_vm0, %v363_v36, 0.0  ;;  %v379_v43 = vsel %vm320_vm0, %v365_v37, 0.0 }
  0xa5   : > { %377 = vadd.xlane.f32.xlu0 %v376_v33  ;;  %374 = vadd.xlane.f32.xlu1 %v373_v40  ;;  %v341_v41 = vpop.xlane.xlu0 %340  ;;  %v344_v42 = vpop.xlane.xlu1 %343 }
  0xa6   : > { %v352_v44 = vmul.f32 0.03125, %v341_v41  ;;  %v353_v45 = vmul.f32 0.03125, %v344_v42  ;;  %v366_v46 = vmul.f32 %v3820_v38, %v3820_v38  ;;  %v367_v47 = vmul.f32 %v3822_v39, %v3822_v39 }
  0xa8   : > { %v3830_v48 = vsub.f32 %v316_v12, %v352_v44  ;;  %v3832_v49 = vsub.f32 %v317_v13, %v353_v45  ;;  %v382_v50 = vsel %vm320_vm0, %v366_v46, 0.0  ;;  %v385_v51 = vsel %vm320_vm0, %v367_v47, 0.0 }
  0xa9   : > { %380 = vadd.xlane.f32.xlu1 %v379_v43  ;;  %383 = vadd.xlane.f32.xlu0 %v382_v50 }
  0xaa   : > { %v368_v52 = vmul.f32 %v3830_v48, %v3830_v48  ;;  %v369_v53 = vmul.f32 %v3832_v49, %v3832_v49 }
  0xac   : > { %v388_v54 = vsel %vm320_vm0, %v368_v52, 0.0  ;;  %v391_v55 = vsel %vm320_vm0, %v369_v53, 0.0 }
  0xad   : > { %386 = vadd.xlane.f32.xlu1 %v385_v51  ;;  %389 = vadd.xlane.f32.xlu0 %v388_v54 }
  0xb1   : > { %392 = vadd.xlane.f32.xlu1 %v391_v55 }
 0x12a   : > { %v372_v56 = vpop.xlane.xlu0 %371 }
 0x12b   : > { %v394_v57 = vmul.f32 0.03125, %v372_v56 }
 0x12d   : > { %v402_v58 = vadd.f32 1e-06, %v394_v57 }
 0x12e   : > { %v375_v59 = vpop.xlane.xlu1 %374  ;;  %v378_v60 = vpop.xlane.xlu0 %377 }
 0x12f   : > { %3494 = vrsqrt.f32 %v402_v58  ;;  %v395_v61 = vmul.f32 0.03125, %v375_v59  ;;  %v396_v62 = vmul.f32 0.03125, %v378_v60 }
 0x131   : > { %v403_v63 = vadd.f32 1e-06, %v395_v61  ;;  %v404_v0 = vadd.f32 1e-06, %v396_v62 }
 0x132   : > { %v381_v1 = vpop.xlane.xlu1 %380  ;;  %v384_v2 = vpop.xlane.xlu0 %383 }
 0x133   : > { %3496 = vrsqrt.f32 %v403_v63  ;;  %v397_v3 = vmul.f32 0.03125, %v381_v1  ;;  %v398_v4 = vmul.f32 0.03125, %v384_v2 }
 0x134   : > { %3498 = vrsqrt.f32 %v404_v0 }
 0x135   : > { %v405_v5 = vadd.f32 1e-06, %v397_v3  ;;  %v406_v6 = vadd.f32 1e-06, %v398_v4 }
 0x136   : > { %v387_v7 = vpop.xlane.xlu1 %386  ;;  %v390_v8 = vpop.xlane.xlu0 %389 }
 0x137   : > { %3500 = vrsqrt.f32 %v405_v5  ;;  %v399_v9 = vmul.f32 0.03125, %v387_v7  ;;  %v400_v10 = vmul.f32 0.03125, %v390_v8 }
 0x138   : > { %3502 = vrsqrt.f32 %v406_v6 }
 0x139   : > { %v407_v11 = vadd.f32 1e-06, %v399_v9  ;;  %v408_v12 = vadd.f32 1e-06, %v400_v10 }
 0x13a   : > { %v393_v13 = vpop.xlane.xlu1 %392 }
 0x13b   : > { %3504 = vrsqrt.f32 %v407_v11  ;;  %v401_v14 = vmul.f32 0.03125, %v393_v13 }
 0x13c   : > { %v3495_v15 = vpop.eup %3494  ;;  %3506 = vrsqrt.f32 %v408_v12 }
 0x13d   : > { %v409_v17 = vadd.f32 1e-06, %v401_v14  ;;  %v418_v18 = vmul.f32 %v3495_v15, %v3802_v20 }
 0x13f   : > { %3508 = vrsqrt.f32 %v409_v17  ;;  %v430_v22 = vmul.f32 %v2983_v16, %v418_v18 }
 0x140   : > { %v3497_v23 = vpop.eup %3496 }
 0x141   : > { %v3499_v24 = vpop.eup %3498  ;;  %v442_v25 = vadd.f32 %v2984_v19, %v430_v22  ;;  %v419_v26 = vmul.f32 %v3497_v23, %v3810_v28 }
 0x142   : > { %v420_v27 = vmul.f32 %v3499_v24, %v3804_v21 }
 0x143   : > { %v452_v30 = vsel %vm320_vm0, %v442_v25, 0.0  ;;  %v431_v31 = vmul.f32 %v2983_v16, %v419_v26 }
 0x144   : > { %v3501_v32 = vpop.eup %3500  ;;  %453 = vadd.xlane.f32.xlu0 %v452_v30  ;;  %v432_v33 = vmul.f32 %v2983_v16, %v420_v27 }
 0x145   : > { %v3503_v20 = vpop.eup %3502  ;;  %v443_v34 = vadd.f32 %v2984_v19, %v431_v31  ;;  %v421_v35 = vmul.f32 %v3501_v32, %v3812_v29 }
 0x146   : > { %v444_v36 = vadd.f32 %v2984_v19, %v432_v33  ;;  %v422_v37 = vmul.f32 %v3503_v20, %v3820_v38 }
 0x147   : > { %v455_v40 = vsel %vm320_vm0, %v443_v34, 0.0  ;;  %v433_v41 = vmul.f32 %v2983_v16, %v421_v35 }
 0x148   : > { %v3505_v42 = vpop.eup %3504  ;;  %456 = vadd.xlane.f32.xlu1 %v455_v40  ;;  %v458_v21 = vsel %vm320_vm0, %v444_v36, 0.0  ;;  %v434_v28 = vmul.f32 %v2983_v16, %v422_v37  ;;  %v3482_v37 = vld [vmem:[%s4682_s4 + $0x8] sm:$0xff]   ;;  %v3483_v40 = vld [vmem:[%s4682_s4] sm:$0xff]  }
 0x149   : > { %v3507_v43 = vpop.eup %3506  ;;  %459 = vadd.xlane.f32.xlu0 %v458_v21  ;;  %v445_v44 = vadd.f32 %v2984_v19, %v433_v41  ;;  %v423_v45 = vmul.f32 %v3505_v42, %v3822_v39  ;;  %3173 = vmatprep.subr.bf16.mxu1 %v3482_v37 }
 0x14a   : > { %v446_v46 = vadd.f32 %v2984_v19, %v434_v28  ;;  %v424_v47 = vmul.f32 %v3507_v43, %v3830_v48  ;;  %3174 = vmatpush3.bf16.msra.mxu1 %v3482_v37 }
 0x14b   : > { %v461_v29 = vsel %vm320_vm0, %v445_v44, 0.0  ;;  %v435_v50 = vmul.f32 %v2983_v16, %v423_v45  ;;  %3175 = vmatprep.subr.bf16.mxu1 %v3483_v40 }
 0x14c   : > { %v3509_v38 = vpop.eup %3508  ;;  %462 = vadd.xlane.f32.xlu1 %v461_v29  ;;  %v464_v51 = vsel %vm320_vm0, %v446_v46, 0.0  ;;  %v436_v52 = vmul.f32 %v2983_v16, %v424_v47 }
 0x14d   : > { %465 = vadd.xlane.f32.xlu0 %v464_v51  ;;  %v447_v53 = vadd.f32 %v2984_v19, %v435_v50  ;;  %v425_v54 = vmul.f32 %v3509_v38, %v3832_v49 }
 0x14e   : > { %v448_v55 = vadd.f32 %v2984_v19, %v436_v52  ;;  %3176 = vmatpush3.bf16.msra.mxu1 %v3483_v40 }
 0x14f   : > { %v467_v56 = vsel %vm320_vm0, %v447_v53, 0.0  ;;  %v437_v57 = vmul.f32 %v2983_v16, %v425_v54 }
 0x150   : > { %468 = vadd.xlane.f32.xlu1 %v467_v56  ;;  %v470_v39 = vsel %vm320_vm0, %v448_v55, 0.0 }
 0x151   : > { %471 = vadd.xlane.f32.xlu0 %v470_v39  ;;  %v449_v48 = vadd.f32 %v2984_v19, %v437_v57 }
 0x153   : > { %v473_v58 = vsel %vm320_vm0, %v449_v48, 0.0 }
 0x154   : > { %474 = vadd.xlane.f32.xlu1 %v473_v58 }
 0x1cd   : > { %v454_v59 = vpop.xlane.xlu0 %453 }
 0x1ce   : > { %v476_v60 = vmul.f32 0.03125, %v454_v59 }
 0x1d0   : > { %v3864_v61 = vsub.f32 %v442_v25, %v476_v60 }
 0x1d1   : > { %v457_v62 = vpop.xlane.xlu1 %456 }
 0x1d2   : > { %v477_v63 = vmul.f32 0.03125, %v457_v62  ;;  %v460_v0 = vpop.xlane.xlu0 %459  ;;  %v492_v49 = vmul.f32 %v3864_v61, %v3864_v61 }
 0x1d3   : > { %v478_v1 = vmul.f32 0.03125, %v460_v0  ;;  %v2985_v0 = vld [vmem:[%s4679_s1 + $0x2] ss:$0 sm:$0xff] }
 0x1d4   : > { %v3868_v2 = vsub.f32 %v443_v34, %v477_v63  ;;  %v500_v3 = vsel %vm320_vm0, %v492_v49, 0.0 }
 0x1d5   : > { %v3871_v4 = vsub.f32 %v444_v36, %v478_v1  ;;  %v463_v5 = vpop.xlane.xlu1 %462  ;;  %501 = vadd.xlane.f32.xlu0 %v500_v3 }
 0x1d6   : > { %v479_v6 = vmul.f32 0.03125, %v463_v5  ;;  %v466_v7 = vpop.xlane.xlu0 %465  ;;  %v493_v8 = vmul.f32 %v3868_v2, %v3868_v2 }
 0x1d7   : > { %v480_v9 = vmul.f32 0.03125, %v466_v7  ;;  %v494_v10 = vmul.f32 %v3871_v4, %v3871_v4 }
 0x1d8   : > { %v3877_v11 = vsub.f32 %v445_v44, %v479_v6  ;;  %v503_v12 = vsel %vm320_vm0, %v493_v8, 0.0  ;;  %v2986_v6 = vld [vmem:[%s4679_s1 + $0x3] ss:$0 sm:$0xff] }
 0x1d9   : > { %v3880_v13 = vsub.f32 %v446_v46, %v480_v9  ;;  %504 = vadd.xlane.f32.xlu1 %v503_v12  ;;  %v469_v14 = vpop.xlane.xlu1 %468  ;;  %v506_v15 = vsel %vm320_vm0, %v494_v10, 0.0 }
 0x1da   : > { %v481_v16 = vmul.f32 0.03125, %v469_v14  ;;  %507 = vadd.xlane.f32.xlu0 %v506_v15  ;;  %v472_v17 = vpop.xlane.xlu0 %471  ;;  %v495_v18 = vmul.f32 %v3877_v11, %v3877_v11 }
 0x1db   : > { %v482_v19 = vmul.f32 0.03125, %v472_v17  ;;  %v496_v22 = vmul.f32 %v3880_v13, %v3880_v13 }
 0x1dc   : > { %v3887_v23 = vsub.f32 %v447_v53, %v481_v16  ;;  %v509_v24 = vsel %vm320_vm0, %v495_v18, 0.0 }
 0x1dd   : > { %v3890_v25 = vsub.f32 %v448_v55, %v482_v19  ;;  %510 = vadd.xlane.f32.xlu1 %v509_v24  ;;  %v475_v26 = vpop.xlane.xlu1 %474  ;;  %v512_v27 = vsel %vm320_vm0, %v496_v22, 0.0 }
 0x1de   : > { %v483_v30 = vmul.f32 0.03125, %v475_v26  ;;  %513 = vadd.xlane.f32.xlu0 %v512_v27  ;;  %v497_v31 = vmul.f32 %v3887_v23, %v3887_v23 }
 0x1df   : > { %v498_v32 = vmul.f32 %v3890_v25, %v3890_v25 }
 0x1e0   : > { %v3897_v33 = vsub.f32 %v449_v48, %v483_v30  ;;  %v515_v20 = vsel %vm320_vm0, %v497_v31, 0.0 }
 0x1e1   : > { %516 = vadd.xlane.f32.xlu1 %v515_v20  ;;  %v518_v34 = vsel %vm320_vm0, %v498_v32, 0.0 }
 0x1e2   : > { %519 = vadd.xlane.f32.xlu0 %v518_v34  ;;  %v499_v35 = vmul.f32 %v3897_v33, %v3897_v33 }
 0x1e4   : > { %v521_v36 = vsel %vm320_vm0, %v499_v35, 0.0 }
 0x1e5   : > { %522 = vadd.xlane.f32.xlu1 %v521_v36 }
 0x25e   : > { %v502_v41 = vpop.xlane.xlu0 %501 }
 0x25f   : > { %v524_v42 = vmul.f32 0.03125, %v502_v41 }
 0x261   : > { %v532_v21 = vadd.f32 1e-06, %v524_v42 }
 0x262   : > { %v505_v28 = vpop.xlane.xlu1 %504 }
 0x263   : > { %3510 = vrsqrt.f32 %v532_v21  ;;  %v525_v43 = vmul.f32 0.03125, %v505_v28  ;;  %v508_v44 = vpop.xlane.xlu0 %507  ;;  %v2987_v21 = vld [vmem:[%s4680_s2] ss:$0 sm:$0xff] }
 0x264   : > { %v526_v45 = vmul.f32 0.03125, %v508_v44 }
 0x265   : > { %v533_v46 = vadd.f32 1e-06, %v525_v43 }
 0x266   : > { %v534_v47 = vadd.f32 1e-06, %v526_v45  ;;  %v511_v29 = vpop.xlane.xlu1 %510 }
 0x267   : > { %3512 = vrsqrt.f32 %v533_v46  ;;  %v527_v50 = vmul.f32 0.03125, %v511_v29  ;;  %v514_v38 = vpop.xlane.xlu0 %513 }
 0x268   : > { %3514 = vrsqrt.f32 %v534_v47  ;;  %v528_v51 = vmul.f32 0.03125, %v514_v38 }
 0x269   : > { %v535_v52 = vadd.f32 1e-06, %v527_v50 }
 0x26a   : > { %v536_v53 = vadd.f32 1e-06, %v528_v51  ;;  %v517_v54 = vpop.xlane.xlu1 %516 }
 0x26b   : > { %3516 = vrsqrt.f32 %v535_v52  ;;  %v529_v55 = vmul.f32 0.03125, %v517_v54  ;;  %v520_v56 = vpop.xlane.xlu0 %519 }
 0x26c   : > { %3518 = vrsqrt.f32 %v536_v53  ;;  %v530_v57 = vmul.f32 0.03125, %v520_v56 }
 0x26d   : > { %v537_v39 = vadd.f32 1e-06, %v529_v55 }
 0x26e   : > { %v538_v48 = vadd.f32 1e-06, %v530_v57  ;;  %v523_v58 = vpop.xlane.xlu1 %522 }
 0x26f   : > { %3520 = vrsqrt.f32 %v537_v39  ;;  %v531_v59 = vmul.f32 0.03125, %v523_v58 }
 0x270   : > { %v3511_v60 = vpop.eup %3510  ;;  %3522 = vrsqrt.f32 %v538_v48 }
 0x271   : > { %v539_v62 = vadd.f32 1e-06, %v531_v59  ;;  %v548_v63 = vmul.f32 %v3511_v60, %v3864_v61 }
 0x273   : > { %3524 = vrsqrt.f32 %v539_v62  ;;  %v560_v5 = vmul.f32 %v2985_v0, %v548_v63 }
 0x274   : > { %v3513_v49 = vpop.eup %3512 }
 0x275   : > { %v3515_v1 = vpop.eup %3514  ;;  %v549_v3 = vmul.f32 %v3513_v49, %v3868_v2  ;;  %v572_v61 = vadd.f32 %v2986_v6, %v560_v5 }
 0x276   : > { %v550_v7 = vmul.f32 %v3515_v1, %v3871_v4 }
 0x277   : > { %v561_v8 = vmul.f32 %v2985_v0, %v549_v3 }
 0x278   : > { %v3517_v9 = vpop.eup %3516  ;;  %v562_v15 = vmul.f32 %v2985_v0, %v550_v7 }
 0x279   : > { %v3519_v10 = vpop.eup %3518  ;;  %v573_v12 = vadd.f32 %v2986_v6, %v561_v8  ;;  %v551_v14 = vmul.f32 %v3517_v9, %v3877_v11 }
 0x27a   : > { %v552_v16 = vmul.f32 %v3519_v10, %v3880_v13  ;;  %v574_v22 = vadd.f32 %v2986_v6, %v562_v15 }
 0x27b   : > { %v580_v17 = vpack.c.bf16 %v573_v12, %v572_v61  ;;  %v563_v18 = vmul.f32 %v2985_v0, %v551_v14 }
 0x27c   : > { %v3521_v2 = vpop.eup %3520  ;;  %v564_v26 = vmul.f32 %v2985_v0, %v552_v16 }
 0x27d   : > { %v3523_v19 = vpop.eup %3522  ;;  %3177 = vmatprep.mubr.msk.bf16.mxu1 %vm320_vm0, %v580_v17  ;;  %v575_v24 = vadd.f32 %v2986_v6, %v563_v18  ;;  %v553_v4 = vmul.f32 %v3521_v2, %v3887_v23 }
 0x27e   : > { %v554_v27 = vmul.f32 %v3523_v19, %v3890_v25  ;;  %v576_v11 = vadd.f32 %v2986_v6, %v564_v26 }
 0x27f   : > { %v581_v30 = vpack.c.bf16 %v575_v24, %v574_v22  ;;  %v565_v31 = vmul.f32 %v2985_v0, %v553_v4 }
 0x280   : > { %v3525_v32 = vpop.eup %3524  ;;  %v566_v34 = vmul.f32 %v2985_v0, %v554_v27 }
 0x281   : > { %3178 = vmatmul.mubr.msk.bf16.vlgmr.msra.gmra.mxu1 %vm320_vm0, %v581_v30  ;;  %v577_v13 = vadd.f32 %v2986_v6, %v565_v31  ;;  %v555_v20 = vmul.f32 %v3525_v32, %v3897_v33 }
 0x282   : > { %v578_v37 = vadd.f32 %v2986_v6, %v566_v34 }
 0x283   : > { %v582_v35 = vpack.c.bf16 %v577_v13, %v576_v11  ;;  %v567_v36 = vmul.f32 %v2985_v0, %v555_v20 }
 0x285   : > { %3181 = vmatprep.mubr.msk.bf16.mxu1 %vm320_vm0, %v582_v35  ;;  %v579_v40 = vadd.f32 %v2986_v6, %v567_v36 }
 0x287   : > { %v583_v23 = vpack.c.bf16 %v579_v40, %v578_v37 }
 0x289   : > { %3182 = vmatmul.mubr.msk.bf16.gmra.mxu1 %vm320_vm0, %v583_v23 }
 0x341   : > { %v3179_v25 = vpop.f32.mrf.mxu1 }
 0x342   : > { %v662_v56 = vadd.f32 %v3179_v25, %v2987_v21 }
 0x343   : > { %v653_v41 = vpop.f32.mrf.mxu1 }
 0x344   : > { %v654_v43 = vadd.f32 %v2987_v21, %v653_v41 }
 0x345   : > { %v3180_v42 = vpop.f32.mrf.mxu1 }
 0x346   : > { %v665_v54 = vadd.f32 %v3180_v42, %v2987_v21 }
 0x347   : > { %v656_v28 = vpop.f32.mrf.mxu1 }
 0x348   : > { %v657_v33 = vadd.f32 %v2987_v21, %v656_v28  ;;  %v3432_v57 = vpack.i.bf16 %v665_v54, %v662_v56  ;;  %v3943_v59 = vpack.c.bf16 %v665_v54, %v662_v56 }
 0x349   : > { %v3183_v44 = vpop.f32.mrf.mxu1 }
 0x34a   : > { %v3931_v45 = vpack.c.bf16 %v657_v33, %v654_v43  ;;  %v678_v29 = vadd.f32 %v3183_v44, %v2987_v21  ;;  %v3437_v39 = vpack.i.bf16 %v657_v33, %v654_v43 }
 0x34b   : > { %v669_v46 = vpop.f32.mrf.mxu1 }
 0x34c   : > { %3193 = vmatprep.mubr.msk.bf16.mxu1 %vm792_vm1, %v3931_v45  ;;  %v670_v51 = vadd.f32 %v2987_v21, %v669_v46 }
 0x34d   : > { %v3184_v47 = vpop.f32.mrf.mxu1 }
 0x34e   : > { %v681_v50 = vadd.f32 %v3184_v47, %v2987_v21 }
 0x34f   : > { %v672_v38 = vpop.f32.mrf.mxu1 }
 0x350   : > { %v673_v52 = vadd.f32 %v2987_v21, %v672_v38  ;;  %v3422_v53 = vpack.i.bf16 %v681_v50, %v678_v29  ;;  %v3935_v48 = vpack.c.bf16 %v681_v50, %v678_v29 }
 0x352   : > { %3423 = vrot.lane.b32.xlu0 %v3422_v53, %s3718_s26  ;;  %v3427_v55 = vpack.i.bf16 %v673_v52, %v670_v51  ;;  %v3939_v58 = vpack.c.bf16 %v673_v52, %v670_v51 }
 0x354   : > { %3428 = vrot.lane.b32.xlu1 %v3427_v55, %s3718_s26 }
 0x356   : > { %3443 = vrot.lane.b32.xlu0 %v3422_v53, %s3719_s28 }
 0x358   : > { %3433 = vrot.lane.b32.xlu1 %v3432_v57, %s3718_s26 }
 0x35a   : > { %3453 = vrot.lane.b32.xlu0 %v3427_v55, %s3719_s28 }
 0x35c   : > { %3438 = vrot.lane.b32.xlu1 %v3437_v39, %s3718_s26 }
 0x35e   : > { %3463 = vrot.lane.b32.xlu0 %v3432_v57, %s3719_s28 }
 0x360   : > { %3448 = vrot.lane.b32.xlu1 %v3422_v53, %s3720_s9 }
 0x362   : > { %3473 = vrot.lane.b32.xlu0 %v3437_v39, %s3719_s28 }
 0x364   : > { %3458 = vrot.lane.b32.xlu1 %v3427_v55, %s3720_s9 }
 0x366   : > { %790 = vrot.lane.b32.xlu0 %v3935_v48, %s3721_s10 }
 0x368   : > { %3468 = vrot.lane.b32.xlu1 %v3432_v57, %s3720_s9 }
 0x36a   : > { %788 = vrot.lane.b32.xlu0 %v3939_v58, %s3721_s10 }
 0x36c   : > { %3478 = vrot.lane.b32.xlu1 %v3437_v39, %s3720_s9 }
 0x36e   : > { %786 = vrot.lane.b32.xlu0 %v3943_v59, %s3721_s10 }
 0x372   : > { %784 = vrot.lane.b32.xlu0 %v3931_v45, %s3721_s10 }
 0x3c4   : > { %v3424_v60 = vpop.permute.xlu0 %3423 }
 0x3c5   : > { %v3426_v62 = vunpack.i.h.bf16 %v3424_v60  ;;  %v3425_v63 = vunpack.i.l.bf16 %v3424_v60 }
 0x3c6   : > { %v3429_v0 = vpop.permute.xlu1 %3428 }
 0x3c7   : > { %v3431_v49 = vunpack.i.h.bf16 %v3429_v0  ;;  %v3430_v1 = vunpack.i.l.bf16 %v3429_v0  ;;  %v3949_v3 = vpack.c.bf16 %v3426_v62, %v3425_v63 }
 0x3c8   : > { %v3444_v5 = vpop.permute.xlu0 %3443 }
 0x3c9   : > { %v3446_v6 = vunpack.i.h.bf16 %v3444_v5  ;;  %v3445_v7 = vunpack.i.l.bf16 %v3444_v5  ;;  %892 = vrot.lane.b32.xlu1 %v3949_v3, %s3721_s10  ;;  %v3953_v61 = vpack.c.bf16 %v3431_v49, %v3430_v1 }
 0x3ca   : > { %v3434_v8 = vpop.permute.xlu1 %3433 }
 0x3cb   : > { %v3436_v9 = vunpack.i.h.bf16 %v3434_v8  ;;  %v3435_v10 = vunpack.i.l.bf16 %v3434_v8  ;;  %v3955_v12 = vpack.c.bf16 %v3446_v6, %v3445_v7 }
 0x3cc   : > { %v3454_v14 = vpop.permute.xlu0 %3453 }
 0x3cd   : > { %v3456_v15 = vunpack.i.h.bf16 %v3454_v14  ;;  %v3455_v16 = vunpack.i.l.bf16 %v3454_v14  ;;  %890 = vrot.lane.b32.xlu1 %v3953_v61, %s3721_s10  ;;  %993 = vrot.lane.b32.xlu0 %v3955_v12, %s3721_s10  ;;  %v3961_v19 = vpack.c.bf16 %v3436_v9, %v3435_v10 }
 0x3ce   : > { %v3439_v17 = vpop.permute.xlu1 %3438 }
 0x3cf   : > { %v3441_v18 = vunpack.i.h.bf16 %v3439_v17  ;;  %v3440_v2 = vunpack.i.l.bf16 %v3439_v17  ;;  %v3963_v22 = vpack.c.bf16 %v3456_v15, %v3455_v16 }
 0x3d0   : > { %v3464_v24 = vpop.permute.xlu0 %3463 }
 0x3d1   : > { %v3466_v4 = vunpack.i.h.bf16 %v3464_v24  ;;  %v3465_v26 = vunpack.i.l.bf16 %v3464_v24  ;;  %888 = vrot.lane.b32.xlu1 %v3961_v19, %s3721_s10  ;;  %991 = vrot.lane.b32.xlu0 %v3963_v22, %s3721_s10  ;;  %v768_v27 = vpack.c.bf16 %v3441_v18, %v3440_v2 }
 0x3d2   : > { %v3449_v30 = vpop.permute.xlu1 %3448 }
 0x3d3   : > { %v3451_v31 = vunpack.i.h.bf16 %v3449_v30  ;;  %v3450_v32 = vunpack.i.l.bf16 %v3449_v30  ;;  %3209 = vmatprep.mubr.msk.bf16.mxu0 %vm792_vm1, %v768_v27  ;;  %v3970_v11 = vpack.c.bf16 %v3466_v4, %v3465_v26 }
 0x3d4   : > { %v3474_v13 = vpop.permute.xlu0 %3473 }
 0x3d5   : > { %v3476_v20 = vunpack.i.h.bf16 %v3474_v13  ;;  %v3475_v34 = vunpack.i.l.bf16 %v3474_v13  ;;  %886 = vrot.lane.b32.xlu1 %v768_v27, %s3721_s10  ;;  %989 = vrot.lane.b32.xlu0 %v3970_v11, %s3721_s10  ;;  %v3975_v40 = vpack.c.bf16 %v3451_v31, %v3450_v32 }
 0x3d6   : > { %v3459_v35 = vpop.permute.xlu1 %3458 }
 0x3d7   : > { %v3461_v36 = vunpack.i.h.bf16 %v3459_v35  ;;  %v3460_v37 = vunpack.i.l.bf16 %v3459_v35  ;;  %v3977_v23 = vpack.c.bf16 %v3476_v20, %v3475_v34 }
 0x3d8   : > { %v791_v25 = vpop.permute.xlu0 %790 }
 0x3d9   : > { %3389 = vmatprep.subr.msk.bf16.mxu1 %vm792_vm1, %v791_v25  ;;  %1094 = vrot.lane.b32.xlu1 %v3975_v40, %s3721_s10  ;;  %v815_v41 = vsel %vm792_vm1, %v791_v25, 0  ;;  %v3985_v43 = vpack.c.bf16 %v3461_v36, %v3460_v37 }
 0x3da   : > { %987 = vrot.lane.b32.xlu0 %v3977_v23, %s3721_s10  ;;  %3186 = vmatpush3.bf16.xpose.msra.mxu1 %v815_v41  ;;  %v3469_v42 = vpop.permute.xlu1 %3468 }
 0x3db   : > { %v3471_v21 = vunpack.i.h.bf16 %v3469_v42  ;;  %v3470_v28 = vunpack.i.l.bf16 %v3469_v42 }
 0x3dc   : > { %v789_v33 = vpop.permute.xlu0 %788 }
 0x3dd   : > { %1092 = vrot.lane.b32.xlu1 %v3985_v43, %s3721_s10  ;;  %3390 = vmatprep.subr.msk.bf16.mxu1 %vm792_vm1, %v789_v33  ;;  %v3992_v29 = vpack.c.bf16 %v3471_v21, %v3470_v28  ;;  %v812_v50 = vsel %vm792_vm1, %v789_v33, 0 }
 0x3de   : > { %1528 = vrot.lane.b32.xlu0 %v3935_v48, %s3722_s12  ;;  %v3479_v44 = vpop.permute.xlu1 %3478 }
 0x3df   : > { %v3481_v46 = vunpack.i.h.bf16 %v3479_v44  ;;  %v3480_v47 = vunpack.i.l.bf16 %v3479_v44 }
 0x3e0   : > { %v787_v38 = vpop.permute.xlu0 %786 }
 0x3e1   : > { %1090 = vrot.lane.b32.xlu1 %v3992_v29, %s3721_s10  ;;  %v4000_v51 = vpack.c.bf16 %v3481_v46, %v3480_v47  ;;  %v809_v52 = vsel %vm792_vm1, %v787_v38, 0 }
 0x3e2   : > { %1526 = vrot.lane.b32.xlu0 %v3939_v58, %s3722_s12  ;;  %3188 = vmatpush3.bf16.xpose.msra.mxu1 %v812_v50 }
 0x3e3   : > { %3391 = vmatprep.subr.msk.bf16.mxu1 %vm792_vm1, %v787_v38 }
 0x3e4   : > { %v785_v53 = vpop.permute.xlu0 %784 }
 0x3e5   : > { %1088 = vrot.lane.b32.xlu1 %v4000_v51, %s3721_s10  ;;  %v806_v54 = vsel %vm792_vm1, %v785_v53, 0 }
 0x3e6   : > { %1524 = vrot.lane.b32.xlu0 %v3943_v59, %s3722_s12 }
 0x3e9   : > { %1617 = vrot.lane.b32.xlu1 %v3949_v3, %s3722_s12 }
 0x3ea   : > { %1522 = vrot.lane.b32.xlu0 %v3931_v45, %s3722_s12  ;;  %3190 = vmatpush3.bf16.xpose.msra.mxu1 %v809_v52 }
 0x3eb   : > { %3392 = vmatprep.subr.msk.bf16.mxu1 %vm792_vm1, %v785_v53 }
 0x3ed   : > { %1613 = vrot.lane.b32.xlu1 %v3961_v19, %s3722_s12 }
 0x3ee   : > { %1611 = vrot.lane.b32.xlu0 %v768_v27, %s3722_s12 }
 0x3f1   : > { %1795 = vrot.lane.b32.xlu1 %v3975_v40, %s3722_s12 }
 0x3f2   : > { %1706 = vrot.lane.b32.xlu0 %v3955_v12, %s3722_s12  ;;  %3192 = vmatpush3.bf16.xpose.msra.mxu1 %v806_v54 }
 0x3f5   : > { %1791 = vrot.lane.b32.xlu1 %v3992_v29, %s3722_s12 }
 0x3f6   : > { %1702 = vrot.lane.b32.xlu0 %v3970_v11, %s3722_s12 }
 0x3f9   : > { %1793 = vrot.lane.b32.xlu1 %v3985_v43, %s3722_s12  ;;  %3194 = vmatmul.mubr.msk.bf16.vlgmr.msra.gmra.mxu1 %vm792_vm1, %v3943_v59 }
 0x3fa   : > { %1615 = vrot.lane.b32.xlu0 %v3953_v61, %s3722_s12  ;;  %3197 = vmatprep.mubr.msk.bf16.mxu1 %vm792_vm1, %v3939_v58 }
 0x3fe   : > { %1704 = vrot.lane.b32.xlu0 %v3963_v22, %s3722_s12 }
 0x401   : > { %3198 = vmatmul.mubr.msk.bf16.gmra.mxu1 %vm792_vm1, %v3935_v48 }
 0x402   : > { %3225 = vmatprep.mubr.msk.bf16.mxu1 %vm792_vm1, %v3977_v23 }
 0x43b   : > { %v893_v45 = vpop.permute.xlu1 %892 }
 0x43c   : > { %3393 = vmatprep.subr.msk.bf16.mxu0 %vm792_vm1, %v893_v45  ;;  %v916_v55 = vsel %vm792_vm1, %v893_v45, 0 }
 0x43d   : > { %3202 = vmatpush3.bf16.xpose.msra.mxu0 %v916_v55 }
 0x43f   : > { %v891_v56 = vpop.permute.xlu1 %890  ;;  %v994_v57 = vpop.permute.xlu0 %993 }
 0x440   : > { %3394 = vmatprep.subr.msk.bf16.mxu0 %vm792_vm1, %v891_v56  ;;  %3397 = vmatprep.subr.msk.bf16.mxu1 %vm792_vm1, %v994_v57  ;;  %v1017_v39 = vsel %vm792_vm1, %v994_v57, 0  ;;  %v913_v48 = vsel %vm792_vm1, %v891_v56, 0 }
 0x441   : > { %3218 = vmatpush3.bf16.xpose.msra.mxu1 %v1017_v39 }
 0x443   : > { %v992_v58 = vpop.permute.xlu0 %991  ;;  %v889_v59 = vpop.permute.xlu1 %888 }
 0x444   : > { %3398 = vmatprep.subr.msk.bf16.mxu1 %vm792_vm1, %v992_v58  ;;  %v1014_v62 = vsel %vm792_vm1, %v992_v58, 0  ;;  %v910_v0 = vsel %vm792_vm1, %v889_v59, 0 }
 0x445   : > { %3204 = vmatpush3.bf16.xpose.msra.mxu0 %v913_v48 }
 0x446   : > { %3395 = vmatprep.subr.msk.bf16.mxu0 %vm792_vm1, %v889_v59 }
 0x447   : > { %v990_v60 = vpop.permute.xlu0 %989  ;;  %v887_v49 = vpop.permute.xlu1 %886 }
 0x448   : > { %v1011_v5 = vsel %vm792_vm1, %v990_v60, 0  ;;  %v907_v6 = vsel %vm792_vm1, %v887_v49, 0 }
 0x449   : > { %3220 = vmatpush3.bf16.xpose.msra.mxu1 %v1014_v62 }
 0x44a   : > { %3399 = vmatprep.subr.msk.bf16.mxu1 %vm792_vm1, %v990_v60 }
 0x44b   : > { %v1095_v7 = vpop.permute.xlu1 %1094 }
 0x44c   : > { %v988_v63 = vpop.permute.xlu0 %987  ;;  %v1118_v14 = vsel %vm792_vm1, %v1095_v7, 0 }
 0x44d   : > { %3206 = vmatpush3.bf16.xpose.msra.mxu0 %v910_v0  ;;  %v1008_v9 = vsel %vm792_vm1, %v988_v63, 0 }
 0x44e   : > { %3396 = vmatprep.subr.msk.bf16.mxu0 %vm792_vm1, %v887_v49 }
 0x44f   : > { %v1093_v15 = vpop.permute.xlu1 %1092 }
 0x450   : > { %v1529_v1 = vpop.permute.xlu0 %1528  ;;  %v1115_v17 = vsel %vm792_vm1, %v1093_v15, 0 }
 0x451   : > { %3222 = vmatpush3.bf16.xpose.msra.mxu1 %v1011_v5 }
 0x452   : > { %3400 = vmatprep.subr.msk.bf16.mxu1 %vm792_vm1, %v988_v63 }
 0x453   : > { %v1091_v18 = vpop.permute.xlu1 %1090 }
 0x454   : > { %v1527_v8 = vpop.permute.xlu0 %1526  ;;  %v1112_v2 = vsel %vm792_vm1, %v1091_v18, 0 }
 0x455   : > { %3208 = vmatpush3.bf16.xpose.msra.mxu0 %v907_v6 }
 0x456   : > { %3401 = vmatprep.subr.msk.bf16.mxu0 %vm792_vm1, %v1095_v7 }
 0x458   : > { %v1525_v10 = vpop.permute.xlu0 %1524 }
 0x459   : > { %3224 = vmatpush3.bf16.xpose.msra.mxu1 %v1008_v9 }
 0x45a   : > { %3249 = vmatprep.subr.bf16.mxu1 %v1529_v1 }
 0x45c   : > { %3210 = vmatmul.mubr.msk.bf16.vlgmr.msra.gmra.mxu0 %vm792_vm1, %v3961_v19  ;;  %v1523_v16 = vpop.permute.xlu0 %1522 }
 0x45d   : > { %3213 = vmatprep.mubr.msk.bf16.mxu0 %vm792_vm1, %v3953_v61  ;;  %3234 = vmatpush3.bf16.xpose.msra.mxu0 %v1118_v14 }
 0x45e   : > { %3402 = vmatprep.subr.msk.bf16.mxu0 %vm792_vm1, %v1093_v15 }
 0x460   : > { %3226 = vmatmul.mubr.msk.bf16.vlgmr.msra.gmra.mxu1 %vm792_vm1, %v3970_v11  ;;  %v1612_v61 = vpop.permute.xlu0 %1611 }
 0x461   : > { %3229 = vmatprep.mubr.msk.bf16.mxu1 %vm792_vm1, %v3963_v22  ;;  %3250 = vmatpush3.bf16.msra.mxu1 %v1529_v1 }
 0x462   : > { %3251 = vmatprep.subr.bf16.mxu1 %v1527_v8 }
 0x464   : > { %3214 = vmatmul.mubr.msk.bf16.gmra.mxu0 %vm792_vm1, %v3949_v3  ;;  %v1089_v3 = vpop.permute.xlu1 %1088  ;;  %v4074_v19 = vpop.permute.xlu0 %1706 }
 0x465   : > { %3236 = vmatpush3.bf16.xpose.msra.mxu0 %v1115_v17  ;;  %3241 = vmatprep.mubr.msk.bf16.mxu0 %vm792_vm1, %v4000_v51  ;;  %v1109_v22 = vsel %vm792_vm1, %v1089_v3, 0 }
 0x466   : > { %3252 = vmatpush3.bf16.msra.mxu1 %v1527_v8  ;;  %3403 = vmatprep.subr.msk.bf16.mxu0 %vm792_vm1, %v1091_v18 }
 0x467   : > { %3253 = vmatprep.subr.bf16.mxu1 %v1525_v10 }
 0x468   : > { %3230 = vmatmul.mubr.msk.bf16.gmra.mxu1 %vm792_vm1, %v3955_v12  ;;  %v1618_v24 = vpop.permute.xlu1 %1617  ;;  %v4079_v4 = vpop.permute.xlu0 %1702 }
 0x46a   : > { %3254 = vmatpush3.bf16.msra.mxu1 %v1525_v10 }
 0x46b   : > { %3255 = vmatprep.subr.bf16.mxu1 %v1523_v16 }
 0x46c   : > { %v1616_v12 = vpop.permute.xlu0 %1615  ;;  %v1614_v26 = vpop.permute.xlu1 %1613 }
 0x46d   : > { %3238 = vmatpush3.bf16.xpose.msra.mxu0 %v1112_v2 }
 0x46e   : > { %3256 = vmatpush3.bf16.msra.mxu1 %v1523_v16  ;;  %3404 = vmatprep.subr.msk.bf16.mxu0 %vm792_vm1, %v1089_v3 }
 0x46f   : > { %3281 = vmatprep.subr.bf16.mxu1 %v4074_v19 }
 0x470   : > { %v4087_v27 = vpop.permute.xlu1 %1795 }
 0x474   : > { %v4192_v18 = vpop.permute.xlu1 %1791 }
 0x475   : > { %3240 = vmatpush3.bf16.xpose.msra.mxu0 %v1109_v22 }
 0x476   : > { %3265 = vmatprep.subr.bf16.mxu0 %v1618_v24 }
 0x47c   : > { %3242 = vmatmul.mubr.msk.bf16.vlgmr.msra.gmra.mxu0 %vm792_vm1, %v3992_v29 }
 0x47d   : > { %3245 = vmatprep.mubr.msk.bf16.mxu0 %vm792_vm1, %v3985_v43  ;;  %3266 = vmatpush3.bf16.msra.mxu0 %v1618_v24 }
 0x47e   : > { %3267 = vmatprep.subr.bf16.mxu0 %v1616_v12 }
 0x481   : > { %3268 = vmatpush3.bf16.msra.mxu0 %v1616_v12  ;;  %v4202_v12 = vpop.permute.xlu1 %1793 }
 0x482   : > { %3269 = vmatprep.subr.bf16.mxu0 %v1614_v26 }
 0x484   : > { %3246 = vmatmul.mubr.msk.bf16.gmra.mxu0 %vm792_vm1, %v3975_v40 }
 0x485   : > { %3270 = vmatpush3.bf16.msra.mxu0 %v1614_v26 }
 0x486   : > { %3271 = vmatprep.subr.bf16.mxu0 %v1612_v61 }
 0x489   : > { %3272 = vmatpush3.bf16.msra.mxu0 %v1612_v61  ;;  %v4194_v61 = vpop.permute.xlu0 %1704 }
 0x48a   : > { %3297 = vmatprep.subr.bf16.mxu0 %v4087_v27 }
 0x4b9   : > { %v4090_v30 = vpop.f32.mrf.mxu1 }
 0x4ba   : > { %v1192_v31 = vsel %vm1185_vm2, %v4090_v30, -inf }
 0x4bb   : > { %1193 = vmax.xlane.f32.xlu0 %v1192_v31  ;;  %v4094_v32 = vpop.f32.mrf.mxu1 }
 0x4bc   : > { %v1186_v13 = vsel %vm1185_vm2, %v4094_v32, -inf }
 0x4bd   : > { %v4096_v11 = vpop.f32.mrf.mxu1 }
 0x4be   : > { %v1195_v36 = vsel %vm1185_vm2, %v4096_v11, -inf }
 0x4bf   : > { %1187 = vmax.xlane.f32.xlu0 %v1186_v13  ;;  %v4100_v20 = vpop.f32.mrf.mxu1 }
 0x4c0   : > { %v1189_v34 = vsel %vm1185_vm2, %v4100_v20, -inf }
 0x4c1   : > { %1190 = vmax.xlane.f32.xlu1 %v1189_v34  ;;  %v4104_v35 = vpop.f32.mrf.mxu1 }
 0x4c2   : > { %v1204_v25 = vsel %vm1185_vm2, %v4104_v35, -inf }
 0x4c3   : > { %1196 = vmax.xlane.f32.xlu0 %v1195_v36  ;;  %v4108_v37 = vpop.f32.mrf.mxu1 }
 0x4c4   : > { %v1198_v21 = vsel %vm1185_vm2, %v4108_v37, -inf }
 0x4c5   : > { %v4110_v40 = vpop.f32.mrf.mxu1 }
 0x4c6   : > { %v1207_v41 = vsel %vm1185_vm2, %v4110_v40, -inf }
 0x4c7   : > { %1205 = vmax.xlane.f32.xlu0 %v1204_v25  ;;  %1208 = vmax.xlane.f32.xlu1 %v1207_v41  ;;  %v4116_v42 = vpop.f32.mrf.mxu1 }
 0x4c8   : > { %v1201_v28 = vsel %vm1185_vm2, %v4116_v42, -inf }
 0x4cb   : > { %1199 = vmax.xlane.f32.xlu0 %v1198_v21  ;;  %1202 = vmax.xlane.f32.xlu1 %v1201_v28 }
 0x51c   : > { %v4122_v43 = vpop.f32.mrf.mxu0 }
 0x51d   : > { %v1216_v33 = vsel %vm1185_vm2, %v4122_v43, -inf }
 0x51e   : > { %v4126_v44 = vpop.f32.mrf.mxu0  ;;  %1217 = vmax.xlane.f32.xlu0 %v1216_v33 }
 0x51f   : > { %v1210_v54 = vsel %vm1185_vm2, %v4126_v44, -inf }
 0x520   : > { %v4128_v46 = vpop.f32.mrf.mxu0  ;;  %v4130_v47 = vpop.f32.mrf.mxu1 }
 0x521   : > { %v1219_v29 = vsel %vm1185_vm2, %v4128_v46, -inf  ;;  %v1240_v50 = vsel %vm1185_vm2, %v4130_v47, -inf }
 0x522   : > { %v4136_v38 = vpop.f32.mrf.mxu0  ;;  %1220 = vmax.xlane.f32.xlu1 %v1219_v29  ;;  %1241 = vmax.xlane.f32.xlu0 %v1240_v50  ;;  %v4138_v52 = vpop.f32.mrf.mxu1 }
 0x523   : > { %v1234_v57 = vsel %vm1185_vm2, %v4138_v52, -inf  ;;  %v1213_v39 = vsel %vm1185_vm2, %v4136_v38, -inf }
 0x524   : > { %v4140_v53 = vpop.f32.mrf.mxu1  ;;  %v4146_v55 = vpop.f32.mrf.mxu0 }
 0x525   : > { %v1243_v45 = vsel %vm1185_vm2, %v4140_v53, -inf  ;;  %v1228_v59 = vsel %vm1185_vm2, %v4146_v55, -inf }
 0x526   : > { %1211 = vmax.xlane.f32.xlu0 %v1210_v54  ;;  %1244 = vmax.xlane.f32.xlu1 %v1243_v45  ;;  %v4148_v56 = vpop.f32.mrf.mxu1  ;;  %v4154_v58 = vpop.f32.mrf.mxu0 }
 0x527   : > { %v1237_v60 = vsel %vm1185_vm2, %v4148_v56, -inf  ;;  %v1222_v7 = vsel %vm1185_vm2, %v4154_v58, -inf }
 0x528   : > { %v4156_v48 = vpop.f32.mrf.mxu1  ;;  %v4162_v62 = vpop.f32.mrf.mxu0 }
 0x529   : > { %v1231_v0 = vsel %vm1185_vm2, %v4162_v62, -inf  ;;  %v1252_v49 = vsel %vm1185_vm2, %v4156_v48, -inf }
 0x52a   : > { %1235 = vmax.xlane.f32.xlu0 %v1234_v57  ;;  %1214 = vmax.xlane.f32.xlu1 %v1213_v39  ;;  %v4164_v63 = vpop.f32.mrf.mxu1  ;;  %v4170_v1 = vpop.f32.mrf.mxu0 }
 0x52b   : > { %v1225_v6 = vsel %vm1185_vm2, %v4170_v1, -inf  ;;  %v1246_v9 = vsel %vm1185_vm2, %v4164_v63, -inf }
 0x52c   : > { %v4172_v5 = vpop.f32.mrf.mxu1 }
 0x52d   : > { %v1255_v15 = vsel %vm1185_vm2, %v4172_v5, -inf }
 0x52e   : > { %1229 = vmax.xlane.f32.xlu0 %v1228_v59  ;;  %1238 = vmax.xlane.f32.xlu1 %v1237_v60  ;;  %v4178_v8 = vpop.f32.mrf.mxu1 }
 0x52f   : > { %v1249_v10 = vsel %vm1185_vm2, %v4178_v8, -inf }
 0x532   : > { %1232 = vmax.xlane.f32.xlu1 %v1231_v0  ;;  %1253 = vmax.xlane.f32.xlu0 %v1252_v49 }
 0x536   : > { %1226 = vmax.xlane.f32.xlu1 %v1225_v6  ;;  %1223 = vmax.xlane.f32.xlu0 %v1222_v7 }
 0x53a   : > { %1247 = vmax.xlane.f32.xlu0 %v1246_v9  ;;  %1250 = vmax.xlane.f32.xlu1 %v1249_v10 }
 0x53c   : > { %v4184_v14 = vpop.f32.mrf.mxu0 }
 0x53d   : > { %v1264_v16 = vsel %vm1185_vm2, %v4184_v14, -inf }
 0x53e   : > { %v4190_v17 = vpop.f32.mrf.mxu0  ;;  %1256 = vmax.xlane.f32.xlu0 %v1255_v15  ;;  %1265 = vmax.xlane.f32.xlu1 %v1264_v16 }
 0x53f   : > { %v1258_v2 = vsel %vm1185_vm2, %v4190_v17, -inf }
 0x540   : > { %v4198_v3 = vpop.f32.mrf.mxu0 }
 0x541   : > { %v1267_v24 = vsel %vm1185_vm2, %v4198_v3, -inf }
 0x542   : > { %1259 = vmax.xlane.f32.xlu1 %v1258_v2  ;;  %v4204_v26 = vpop.f32.mrf.mxu0 }
 0x543   : > { %v1261_v36 = vsel %vm1185_vm2, %v4204_v26, -inf }
 0x544   : > { %v1194_v22 = vpop.xlane.xlu0 %1193  ;;  %v4210_v25 = vpop.f32.mrf.mxu0 }
 0x545   : > { %v1284_v31 = vsub.f32 %v4090_v30, %v1194_v22  ;;  %v1276_v30 = vsel %vm1185_vm2, %v4210_v25, -inf }
 0x546   : > { %1268 = vmax.xlane.f32.xlu1 %v1267_v24  ;;  %v4216_v45 = vpop.f32.mrf.mxu0 }
 0x547   : > { %v1318_v33 = vmul.f32 1.442695, %v1284_v31 }
 0x548   : > { %v1188_v13 = vpop.xlane.xlu0 %1187  ;;  %v4222_v60 = vpop.f32.mrf.mxu0 }
 0x549   : > { %v1282_v34 = vsub.f32 %v4094_v32, %v1188_v13 }
 0x54a   : > { %v1191_v41 = vpop.xlane.xlu1 %1190  ;;  %1262 = vmax.xlane.f32.xlu1 %v1261_v36 }
 0x54b   : > { %v1314_v21 = vmul.f32 1.442695, %v1282_v34  ;;  %v1283_v28 = vsub.f32 %v4100_v20, %v1191_v41 }
 0x54c   : > { %v1197_v29 = vpop.xlane.xlu0 %1196 }
 0x54d   : > { %v1316_v50 = vmul.f32 1.442695, %v1283_v28  ;;  %v1285_v54 = vsub.f32 %v4096_v11, %v1197_v29  ;;  %3526 = vpow2.f32 %v1314_v21  ;;  %v1270_v11 = vsel %vm1185_vm2, %v4216_v45, -inf }
 0x54e   : > { %1277 = vmax.xlane.f32.xlu1 %v1276_v30 }
 0x54f   : > { %3528 = vpow2.f32 %v1316_v50  ;;  %v1320_v32 = vmul.f32 1.442695, %v1285_v54 }
 0x550   : > { %3530 = vpow2.f32 %v1318_v33  ;;  %v1209_v57 = vpop.xlane.xlu1 %1208  ;;  %v1206_v39 = vpop.xlane.xlu0 %1205 }
 0x551   : > { %3532 = vpow2.f32 %v1320_v32  ;;  %v1289_v20 = vsub.f32 %v4110_v40, %v1209_v57  ;;  %v1288_v59 = vsub.f32 %v4104_v35, %v1206_v39  ;;  %v1279_v35 = vsel %vm1185_vm2, %v4222_v60, -inf  ;;  %v4230_v40 = vpop.f32.mrf.mxu0 }
 0x552   : > { %1271 = vmax.xlane.f32.xlu1 %v1270_v11  ;;  %v1273_v2 = vsel %vm1185_vm2, %v4230_v40, -inf }
 0x553   : > { %v1328_v0 = vmul.f32 1.442695, %v1289_v20  ;;  %v1326_v49 = vmul.f32 1.442695, %v1288_v59 }
 0x554   : > { %v1203_v6 = vpop.xlane.xlu1 %1202  ;;  %1700 = vrot.lane.b32.xlu0 %v3977_v23, %s3722_s12  ;;  %v1200_v7 = vpop.xlane.xlu0 %1199 }
 0x555   : > { %v1287_v9 = vsub.f32 %v4116_v42, %v1203_v6  ;;  %v1286_v10 = vsub.f32 %v4108_v37, %v1200_v7  ;;  %3534 = vpow2.f32 %v1328_v0 }
 0x556   : > { %1280 = vmax.xlane.f32.xlu1 %v1279_v35  ;;  %3536 = vpow2.f32 %v1326_v49 }
 0x557   : > { %v1324_v15 = vmul.f32 1.442695, %v1287_v9  ;;  %v1322_v16 = vmul.f32 1.442695, %v1286_v10 }
 0x559   : > { %3538 = vpow2.f32 %v1324_v15 }
 0x55a   : > { %3540 = vpow2.f32 %v1322_v16  ;;  %1274 = vmax.xlane.f32.xlu1 %v1273_v2  ;;  %v3527_v23 = vpop.eup %3526 }
 0x55c   : > { %v3529_v42 = vpop.eup %3528 }
 0x55d   : > { %v3531_v22 = vpop.eup %3530  ;;  %v1506_v37 = vpack.c.bf16 %v3529_v42, %v3527_v23 }
 0x55e   : > { %v3533_v24 = vpop.eup %3532  ;;  %v1384_v33 = vsel %vm1185_vm2, %v3531_v22, 0.0 }
 0x55f   : > { %v1507_v31 = vpack.c.bf16 %v3533_v24, %v3531_v22  ;;  %3257 = vmatprep.mubr.msk.bf16.mxu1 %vm1185_vm2, %v1506_v37 }
 0x561   : > { %3258 = vmatmul.mubr.msk.bf16.vlgmr.msra.gmra.mxu1 %vm1185_vm2, %v1507_v31 }
 0x562   : > { %3282 = vmatpush3.bf16.msra.mxu1 %v4074_v19  ;;  %v3535_v13 = vpop.eup %3534  ;;  %v1378_v19 = vsel %vm1185_vm2, %v3527_v23, 0.0 }
 0x563   : > { %3283 = vmatprep.subr.bf16.mxu1 %v4194_v61  ;;  %v3537_v34 = vpop.eup %3536 }
 0x564   : > { %v1509_v28 = vpack.c.bf16 %v3535_v13, %v3537_v34  ;;  %v1396_v29 = vsel %vm1185_vm2, %v3537_v34, 0.0 }
 0x566   : > { %v3539_v36 = vpop.eup %3538  ;;  %3284 = vmatpush3.bf16.msra.mxu1 %v4194_v61  ;;  %v1387_v61 = vsel %vm1185_vm2, %v3533_v24, 0.0 }
 0x567   : > { %v3541_v41 = vpop.eup %3540  ;;  %3285 = vmatprep.subr.bf16.mxu1 %v4079_v4  ;;  %v1393_v54 = vsel %vm1185_vm2, %v3539_v36, 0.0 }
 0x568   : > { %v1508_v21 = vpack.c.bf16 %v3539_v36, %v3541_v41  ;;  %v1390_v50 = vsel %vm1185_vm2, %v3541_v41, 0.0 }
 0x56a   : > { %3261 = vmatprep.mubr.msk.bf16.mxu1 %vm1185_vm2, %v1508_v21  ;;  %3286 = vmatpush3.bf16.msra.mxu1 %v4079_v4  ;;  %v1381_v4 = vsel %vm1185_vm2, %v3529_v42, 0.0 }
 0x56b   : > { %3262 = vmatmul.mubr.msk.bf16.gmra.mxu1 %vm1185_vm2, %v1509_v28  ;;  %1789 = vrot.lane.b32.xlu1 %v4000_v51, %s3722_s12  ;;  %v1399_v51 = vsel %vm1185_vm2, %v3535_v13, 0.0 }
 0x573   : > { %1379 = vadd.xlane.f32.xlu0 %v1378_v19 }
 0x577   : > { %1385 = vadd.xlane.f32.xlu0 %v1384_v33 }
 0x57b   : > { %1388 = vadd.xlane.f32.xlu0 %v1387_v61 }
 0x57f   : > { %1397 = vadd.xlane.f32.xlu0 %v1396_v29 }
 0x583   : > { %1391 = vadd.xlane.f32.xlu0 %v1390_v50 }
 0x58f   : > { %1382 = vadd.xlane.f32.xlu1 %v1381_v4 }
 0x593   : > { %1400 = vadd.xlane.f32.xlu1 %v1399_v51 }
 0x597   : > { %1394 = vadd.xlane.f32.xlu1 %v1393_v54 }
 0x5a7   : > { %v1218_v30 = vpop.xlane.xlu0 %1217 }
 0x5a8   : > { %v1292_v32 = vsub.f32 %v4122_v43, %v1218_v30 }
 0x5aa   : > { %v1334_v57 = vmul.f32 1.442695, %v1292_v32 }
 0x5ab   : > { %v1221_v39 = vpop.xlane.xlu1 %1220  ;;  %v1242_v20 = vpop.xlane.xlu0 %1241 }
 0x5ac   : > { %3542 = vpow2.f32 %v1334_v57  ;;  %v1293_v59 = vsub.f32 %v4128_v46, %v1221_v39  ;;  %v1300_v11 = vsub.f32 %v4130_v47, %v1242_v20 }
 0x5ae   : > { %v1336_v0 = vmul.f32 1.442695, %v1293_v59  ;;  %v1350_v49 = vmul.f32 1.442695, %v1300_v11 }
 0x5af   : > { %v1245_v6 = vpop.xlane.xlu1 %1244  ;;  %v1212_v7 = vpop.xlane.xlu0 %1211 }
 0x5b0   : > { %3544 = vpow2.f32 %v1336_v0  ;;  %v1301_v9 = vsub.f32 %v4140_v53, %v1245_v6  ;;  %v1290_v10 = vsub.f32 %v4126_v44, %v1212_v7 }
 0x5b1   : > { %3546 = vpow2.f32 %v1350_v49 }
 0x5b2   : > { %v1352_v35 = vmul.f32 1.442695, %v1301_v9  ;;  %v1330_v43 = vmul.f32 1.442695, %v1290_v10 }
 0x5b3   : > { %v1215_v15 = vpop.xlane.xlu1 %1214  ;;  %v1236_v16 = vpop.xlane.xlu0 %1235 }
 0x5b4   : > { %3548 = vpow2.f32 %v1352_v35  ;;  %v1291_v2 = vsub.f32 %v4136_v38, %v1215_v15  ;;  %v1298_v46 = vsub.f32 %v4138_v52, %v1236_v16 }
 0x5b5   : > { %3550 = vpow2.f32 %v1330_v43 }
 0x5b6   : > { %v1332_v47 = vmul.f32 1.442695, %v1291_v2  ;;  %v1346_v23 = vmul.f32 1.442695, %v1298_v46 }
 0x5b7   : > { %v1239_v42 = vpop.xlane.xlu1 %1238  ;;  %v1230_v22 = vpop.xlane.xlu0 %1229 }
 0x5b8   : > { %3552 = vpow2.f32 %v1332_v47  ;;  %v1299_v53 = vsub.f32 %v4148_v56, %v1239_v42  ;;  %v1296_v44 = vsub.f32 %v4146_v55, %v1230_v22 }
 0x5b9   : > { %v3543_v37 = vpop.eup %3542  ;;  %3554 = vpow2.f32 %v1346_v23  ;;  %v1926_v23 = vld [vmem:[%s4683_s5] sm:$0xf] }
 0x5ba   : > { %v1348_v24 = vmul.f32 1.442695, %v1299_v53  ;;  %v1342_v31 = vmul.f32 1.442695, %v1296_v44  ;;  %v1408_v13 = vsel %vm1185_vm2, %v3543_v37, 0.0 }
 0x5bb   : > { %v1233_v34 = vpop.xlane.xlu1 %1232  ;;  %1409 = vadd.xlane.f32.xlu0 %v1408_v13  ;;  %v1254_v38 = vpop.xlane.xlu0 %1253 }
 0x5bc   : > { %3556 = vpow2.f32 %v1348_v24  ;;  %v1297_v52 = vsub.f32 %v4162_v62, %v1233_v34  ;;  %v1304_v54 = vsub.f32 %v4156_v48, %v1254_v38 }
 0x5bd   : > { %v3545_v36 = vpop.eup %3544  ;;  %3558 = vpow2.f32 %v1342_v31 }
 0x5be   : > { %v4264_v41 = vpop.eup %3546  ;;  %v1344_v21 = vmul.f32 1.442695, %v1297_v52  ;;  %v1411_v56 = vsel %vm1185_vm2, %v3545_v36, 0.0  ;;  %v1511_v48 = vpack.c.bf16 %v3545_v36, %v3543_v37  ;;  %v1358_v6 = vmul.f32 1.442695, %v1304_v54 }
 0x5bf   : > { %v1227_v55 = vpop.xlane.xlu1 %1226  ;;  %1412 = vadd.xlane.f32.xlu1 %v1411_v56  ;;  %v1432_v28 = vsel %vm1185_vm2, %v4264_v41, 0.0  ;;  %v1224_v19 = vpop.xlane.xlu0 %1223  ;;  %v1944_v37 = vsel %vm1942_vm3, %v1926_v23, 0 }
 0x5c0   : > { %3560 = vpow2.f32 %v1344_v21  ;;  %v1295_v33 = vsub.f32 %v4170_v1, %v1227_v55  ;;  %1433 = vadd.xlane.f32.xlu0 %v1432_v28  ;;  %v1294_v61 = vsub.f32 %v4154_v58, %v1224_v19 }
 0x5c1   : > { %v4271_v62 = vpop.eup %3548 }
 0x5c2   : > { %v3551_v29 = vpop.eup %3550  ;;  %v1340_v50 = vmul.f32 1.442695, %v1295_v33  ;;  %v1338_v4 = vmul.f32 1.442695, %v1294_v61  ;;  %v1435_v51 = vsel %vm1185_vm2, %v4271_v62, 0.0  ;;  %v1515_v22 = vpack.c.bf16 %v4271_v62, %v4264_v41 }
 0x5c3   : > { %1436 = vadd.xlane.f32.xlu1 %v1435_v51  ;;  %v1251_v30 = vpop.xlane.xlu1 %1250  ;;  %v1402_v32 = vsel %vm1185_vm2, %v3551_v29, 0.0  ;;  %v1248_v57 = vpop.xlane.xlu0 %1247 }
 0x5c4   : > { %3562 = vpow2.f32 %v1340_v50  ;;  %v1303_v1 = vsub.f32 %v4178_v8, %v1251_v30  ;;  %1403 = vadd.xlane.f32.xlu0 %v1402_v32  ;;  %v1302_v58 = vsub.f32 %v4164_v63, %v1248_v57 }
 0x5c5   : > { %v3553_v39 = vpop.eup %3552  ;;  %3564 = vpow2.f32 %v1338_v4 }
 0x5c6   : > { %v3555_v20 = vpop.eup %3554  ;;  %v1356_v59 = vmul.f32 1.442695, %v1303_v1  ;;  %v1354_v11 = vmul.f32 1.442695, %v1302_v58  ;;  %v1405_v0 = vsel %vm1185_vm2, %v3553_v39, 0.0  ;;  %v1510_v49 = vpack.c.bf16 %v3553_v39, %v3551_v29 }
 0x5c7   : > { %1406 = vadd.xlane.f32.xlu1 %v1405_v0  ;;  %v1266_v7 = vpop.xlane.xlu1 %1265  ;;  %v1426_v9 = vsel %vm1185_vm2, %v3555_v20, 0.0  ;;  %v1257_v10 = vpop.xlane.xlu0 %1256 }
 0x5c8   : > { %3566 = vpow2.f32 %v1356_v59  ;;  %v1308_v8 = vsub.f32 %v4184_v14, %v1266_v7  ;;  %1427 = vadd.xlane.f32.xlu0 %v1426_v9  ;;  %v1305_v63 = vsub.f32 %v4172_v5, %v1257_v10  ;;  %3273 = vmatprep.mubr.msk.bf16.mxu0 %vm1185_vm2, %v1510_v49 }
 0x5c9   : > { %v3557_v35 = vpop.eup %3556  ;;  %3568 = vpow2.f32 %v1354_v11  ;;  %3274 = vmatmul.mubr.msk.bf16.vlgmr.msra.gmra.mxu0 %vm1185_vm2, %v1511_v48 }
 0x5ca   : > { %v3559_v43 = vpop.eup %3558  ;;  %v1366_v15 = vmul.f32 1.442695, %v1308_v8  ;;  %v1360_v16 = vmul.f32 1.442695, %v1305_v63  ;;  %3298 = vmatpush3.bf16.msra.mxu0 %v4087_v27  ;;  %v1429_v2 = vsel %vm1185_vm2, %v3557_v35, 0.0  ;;  %v1514_v46 = vpack.c.bf16 %v3557_v35, %v3555_v20 }
 0x5cb   : > { %3570 = vpow2.f32 %v1358_v6  ;;  %3299 = vmatprep.subr.bf16.mxu0 %v4202_v12  ;;  %1430 = vadd.xlane.f32.xlu1 %v1429_v2  ;;  %v1260_v14 = vpop.xlane.xlu1 %1259  ;;  %v1420_v5 = vsel %vm1185_vm2, %v3559_v43, 0.0  ;;  %v1701_v47 = vpop.permute.xlu0 %1700 }
 0x5cc   : > { %3572 = vpow2.f32 %v1366_v15  ;;  %v1306_v42 = vsub.f32 %v4190_v17, %v1260_v14  ;;  %1421 = vadd.xlane.f32.xlu0 %v1420_v5  ;;  %3287 = vmatprep.subr.bf16.mxu1 %v1701_v47 }
 0x5cd   : > { %v3561_v27 = vpop.eup %3560  ;;  %3574 = vpow2.f32 %v1360_v16  ;;  %3289 = vmatprep.mubr.msk.bf16.mxu1 %vm1185_vm2, %v1514_v46  ;;  %3288 = vmatpush3.bf16.msra.mxu1 %v1701_v47 }
 0x5ce   : > { %v1362_v53 = vmul.f32 1.442695, %v1306_v42  ;;  %3300 = vmatpush3.bf16.msra.mxu0 %v4202_v12  ;;  %v1423_v44 = vsel %vm1185_vm2, %v3561_v27, 0.0  ;;  %3405 = vmatprep.subr.msk.bf16.mxu1 %vm1942_vm3, %v1926_v23  ;;  %v1927_v23 = vld [vmem:[%s4683_s5 + $0x4] sm:$0xf] }
 0x5cf   : > { %3301 = vmatprep.subr.bf16.mxu0 %v4192_v18  ;;  %1424 = vadd.xlane.f32.xlu1 %v1423_v44  ;;  %v1269_v17 = vpop.xlane.xlu1 %1268  ;;  %v2024_v42 = vsel %vm1942_vm3, %v1927_v23, 0 }
 0x5d0   : > { %3576 = vpow2.f32 %v1362_v53  ;;  %v1309_v24 = vsub.f32 %v4198_v3, %v1269_v17  ;;  %3290 = vmatmul.mubr.msk.bf16.vlgmr.msra.gmra.mxu1 %vm1185_vm2, %v1515_v22  ;;  %v1513_v3 = vpack.c.bf16 %v3561_v27, %v3559_v43  ;;  %v1928_v53 = vld [vmem:[%s4683_s5 + $0x8] sm:$0xf] }
 0x5d1   : > { %v3563_v31 = vpop.eup %3562  ;;  %3314 = vmatpush3.bf16.msra.mxu1 %v1944_v37 }
 0x5d2   : > { %v3565_v13 = vpop.eup %3564  ;;  %v1368_v34 = vmul.f32 1.442695, %v1309_v24  ;;  %3302 = vmatpush3.bf16.msra.mxu0 %v4192_v18  ;;  %v1417_v12 = vsel %vm1185_vm2, %v3563_v31, 0.0  ;;  %3407 = vmatprep.subr.msk.bf16.mxu1 %vm1942_vm3, %v1928_v53 }
 0x5d3   : > { %1418 = vadd.xlane.f32.xlu1 %v1417_v12  ;;  %v1263_v38 = vpop.xlane.xlu1 %1262  ;;  %v1414_v52 = vsel %vm1185_vm2, %v3565_v13, 0.0  ;;  %v1512_v36 = vpack.c.bf16 %v3563_v31, %v3565_v13 }
 0x5d4   : > { %3578 = vpow2.f32 %v1368_v34  ;;  %v1307_v41 = vsub.f32 %v4204_v26, %v1263_v38  ;;  %1415 = vadd.xlane.f32.xlu0 %v1414_v52 }
 0x5d5   : > { %v3567_v21 = vpop.eup %3566  ;;  %3277 = vmatprep.mubr.msk.bf16.mxu0 %vm1185_vm2, %v1512_v36 }
 0x5d6   : > { %v3569_v56 = vpop.eup %3568  ;;  %v1364_v55 = vmul.f32 1.442695, %v1307_v41  ;;  %3278 = vmatmul.mubr.msk.bf16.gmra.mxu0 %vm1185_vm2, %v1513_v3  ;;  %v1441_v18 = vsel %vm1185_vm2, %v3567_v21, 0.0 }
 0x5d7   : > { %1442 = vadd.xlane.f32.xlu1 %v1441_v18  ;;  %v1278_v28 = vpop.xlane.xlu1 %1277  ;;  %v1438_v19 = vsel %vm1185_vm2, %v3569_v56, 0.0  ;;  %v1516_v33 = vpack.c.bf16 %v3567_v21, %v3569_v56 }
 0x5d8   : > { %v3571_v61 = vpop.eup %3570  ;;  %3580 = vpow2.f32 %v1364_v55  ;;  %1439 = vadd.xlane.f32.xlu0 %v1438_v19  ;;  %v1312_v29 = vsub.f32 %v4210_v25, %v1278_v28 }
 0x5d9   : > { %v3573_v26 = vpop.eup %3572  ;;  %3293 = vmatprep.mubr.msk.bf16.mxu1 %vm1185_vm2, %v1516_v33  ;;  %v1444_v11 = vsel %vm1185_vm2, %v3571_v61, 0.0  ;;  %v2104_v33 = vsel %vm1942_vm3, %v1928_v53, 0 }
 0x5da   : > { %v3575_v62 = vpop.eup %3574  ;;  %v1456_v50 = vsel %vm1185_vm2, %v3573_v26, 0.0  ;;  %v1374_v32 = vmul.f32 1.442695, %v1312_v29 }
 0x5db   : > { %v1272_v4 = vpop.xlane.xlu1 %1271  ;;  %v1517_v51 = vpack.c.bf16 %v3575_v62, %v3571_v61  ;;  %v1447_v10 = vsel %vm1185_vm2, %v3575_v62, 0.0 }
 0x5dc   : > { %v1310_v54 = vsub.f32 %v4216_v45, %v1272_v4  ;;  %1457 = vadd.xlane.f32.xlu0 %v1456_v50 }
 0x5dd   : > { %v3577_v30 = vpop.eup %3576  ;;  %3294 = vmatmul.mubr.msk.bf16.gmra.mxu1 %vm1185_vm2, %v1517_v51 }
 0x5de   : > { %v1370_v57 = vmul.f32 1.442695, %v1310_v54  ;;  %v1450_v1 = vsel %vm1185_vm2, %v3577_v30, 0.0 }
 0x5df   : > { %v1281_v58 = vpop.xlane.xlu1 %1280 }
 0x5e0   : > { %3582 = vpow2.f32 %v1370_v57  ;;  %v1313_v39 = vsub.f32 %v4222_v60, %v1281_v58  ;;  %1451 = vadd.xlane.f32.xlu0 %v1450_v1 }
 0x5e1   : > { %v3579_v25 = vpop.eup %3578  ;;  %3584 = vpow2.f32 %v1374_v32 }
 0x5e2   : > { %v1459_v20 = vsel %vm1185_vm2, %v3579_v25, 0.0  ;;  %v1376_v59 = vmul.f32 1.442695, %v1313_v39  ;;  %v1519_v9 = vpack.c.bf16 %v3579_v25, %v3573_v26  ;;  %v4346_v26 = vld [vmem:[%s4683_s5 + $0xc] sm:$0xf] }
 0x5e3   : > { %1460 = vadd.xlane.f32.xlu1 %v1459_v20  ;;  %v1275_v45 = vpop.xlane.xlu1 %1274 }
 0x5e4   : > { %v1311_v0 = vsub.f32 %v4230_v40, %v1275_v45  ;;  %1445 = vadd.xlane.f32.xlu0 %v1444_v11  ;;  %3586 = vpow2.f32 %v1376_v59 }
 0x5e5   : > { %v3581_v49 = vpop.eup %3580 }
 0x5e6   : > { %v1372_v48 = vmul.f32 1.442695, %v1311_v0  ;;  %v1453_v6 = vsel %vm1185_vm2, %v3581_v49, 0.0  ;;  %v1518_v7 = vpack.c.bf16 %v3581_v49, %v3577_v30 }
 0x5e7   : > { %1454 = vadd.xlane.f32.xlu1 %v1453_v6  ;;  %v1790_v60 = vpop.permute.xlu1 %1789 }
 0x5e8   : > { %3588 = vpow2.f32 %v1372_v48  ;;  %3303 = vmatprep.subr.bf16.mxu0 %v1790_v60  ;;  %3305 = vmatprep.mubr.msk.bf16.mxu0 %vm1185_vm2, %v1518_v7 }
 0x5e9   : > { %3304 = vmatpush3.bf16.msra.mxu0 %v1790_v60 }
 0x5ea   : > { %3406 = vmatprep.subr.msk.bf16.mxu0 %vm1942_vm3, %v1927_v23 }
 0x5eb   : > { %1448 = vadd.xlane.f32.xlu1 %v1447_v10 }
 0x5ec   : > { %3306 = vmatmul.mubr.msk.bf16.vlgmr.msra.gmra.mxu0 %vm1185_vm2, %v1519_v9 }
 0x5ed   : > { %v3583_v40 = vpop.eup %3582  ;;  %3324 = vmatpush3.bf16.msra.mxu0 %v2024_v42 }
 0x5ee   : > { %v1462_v8 = vsel %vm1185_vm2, %v3583_v40, 0.0  ;;  %v3585_v63 = vpop.eup %3584  ;;  %3408 = vmatprep.subr.msk.bf16.mxu0 %vm1942_vm3, %v4346_v26 }
 0x5ef   : > { %1463 = vadd.xlane.f32.xlu0 %v1462_v8  ;;  %v1468_v35 = vsel %vm1185_vm2, %v3585_v63, 0.0 }
 0x5f1   : > { %v3587_v43 = vpop.eup %3586 }
 0x5f2   : > { %v1521_v46 = vpack.c.bf16 %v3587_v43, %v3585_v63  ;;  %v1471_v14 = vsel %vm1185_vm2, %v3587_v43, 0.0 }
 0x5f3   : > { %1469 = vadd.xlane.f32.xlu0 %v1468_v35 }
 0x5f5   : > { %v3589_v15 = vpop.eup %3588 }
 0x5f6   : > { %v1465_v16 = vsel %vm1185_vm2, %v3589_v15, 0.0  ;;  %v1520_v2 = vpack.c.bf16 %v3589_v15, %v3583_v40 }
 0x5f7   : > { %1466 = vadd.xlane.f32.xlu1 %v1465_v16 }
 0x5f8   : > { %3309 = vmatprep.mubr.msk.bf16.mxu0 %vm1185_vm2, %v1520_v2 }
 0x5f9   : > { %3310 = vmatmul.mubr.msk.bf16.gmra.mxu0 %vm1185_vm2, %v1521_v46 }
 0x5fb   : > { %1472 = vadd.xlane.f32.xlu1 %v1471_v14 }
 0x5fc   : > { %v1380_v5 = vpop.xlane.xlu0 %1379 }
 0x600   : > { %v1386_v47 = vpop.xlane.xlu0 %1385 }
 0x604   : > { %v1389_v27 = vpop.xlane.xlu0 %1388 }
 0x605   : > { %3590 = vrcp.f32 %v1389_v27 }
 0x608   : > { %v1398_v44 = vpop.xlane.xlu0 %1397 }
 0x60c   : > { %v1392_v17 = vpop.xlane.xlu0 %1391 }
 0x612   : > { %v3591_v34 = vpop.eup %3590 }
 0x618   : > { %v1383_v22 = vpop.xlane.xlu1 %1382 }
 0x619   : > { %3592 = vrcp.f32 %v1383_v22 }
 0x61a   : > { %3594 = vrcp.f32 %v1380_v5 }
 0x61b   : > { %3596 = vrcp.f32 %v1386_v47 }
 0x61c   : > { %v1401_v37 = vpop.xlane.xlu1 %1400  ;;  %3598 = vrcp.f32 %v1392_v17 }
 0x61d   : > { %3600 = vrcp.f32 %v1401_v37 }
 0x620   : > { %v1395_v24 = vpop.xlane.xlu1 %1394 }
 0x621   : > { %v3259_v31 = vpop.f32.mrf.mxu1  ;;  %3602 = vrcp.f32 %v1395_v24 }
 0x622   : > { %3604 = vrcp.f32 %v1398_v44 }
 0x623   : > { %v1580_v13 = vpop.f32.mrf.mxu1 }
 0x625   : > { %v3260_v12 = vpop.f32.mrf.mxu1 }
 0x626   : > { %v3593_v38 = vpop.eup %3592  ;;  %v1881_v36 = vmul.f32 %v3591_v34, %v3260_v12 }
 0x627   : > { %v3595_v52 = vpop.eup %3594  ;;  %v1583_v41 = vpop.f32.mrf.mxu1 }
 0x628   : > { %v3597_v3 = vpop.eup %3596  ;;  %v1878_v21 = vmul.f32 %v3595_v52, %v1580_v13  ;;  %v1879_v56 = vmul.f32 %v3593_v38, %v1583_v41  ;;  %v2184_v13 = vsel %vm1942_vm3, %v4346_v26, 0 }
 0x629   : > { %v1880_v55 = vmul.f32 %v3597_v3, %v3259_v31  ;;  %v3599_v62 = vpop.eup %3598 }
 0x62a   : > { %v1910_v18 = vpack.c.bf16 %v1879_v56, %v1878_v21  ;;  %v3601_v50 = vpop.eup %3600 }
 0x62b   : > { %v1911_v28 = vpack.c.bf16 %v1881_v36, %v1880_v55  ;;  %v3263_v19 = vpop.f32.mrf.mxu1 }
 0x62c   : > { %3315 = vmatprep.mubr.msk.bf16.mxu1 %vm792_vm1, %v1910_v18 }
 0x62d   : > { %v1596_v61 = vpop.f32.mrf.mxu1  ;;  %3316 = vmatmul.mubr.msk.bf16.vlgmr.msra.gmra.mxu1 %vm792_vm1, %v1911_v28 }
 0x62e   : > { %3334 = vmatpush3.bf16.msra.mxu1 %v2104_v33  ;;  %v3603_v4 = vpop.eup %3602  ;;  %v1882_v32 = vmul.f32 %v3599_v62, %v1596_v61 }
 0x62f   : > { %v3264_v29 = vpop.f32.mrf.mxu1  ;;  %v3605_v30 = vpop.eup %3604 }
 0x630   : > { %v1885_v51 = vmul.f32 %v3601_v50, %v3264_v29  ;;  %v1884_v1 = vmul.f32 %v3605_v30, %v3263_v19 }
 0x631   : > { %v1599_v54 = vpop.f32.mrf.mxu1 }
 0x632   : > { %v1883_v57 = vmul.f32 %v3603_v4, %v1599_v54  ;;  %v1913_v39 = vpack.c.bf16 %v1885_v51, %v1884_v1 }
 0x634   : > { %v1912_v58 = vpack.c.bf16 %v1883_v57, %v1882_v32 }
 0x636   : > { %3319 = vmatprep.mubr.msk.bf16.mxu1 %vm792_vm1, %v1912_v58 }
 0x637   : > { %3320 = vmatmul.mubr.msk.bf16.gmra.mxu1 %vm792_vm1, %v1913_v39 }
 0x644   : > { %v1410_v20 = vpop.xlane.xlu0 %1409 }
 0x648   : > { %v1413_v25 = vpop.xlane.xlu1 %1412 }
 0x649   : > { %v1434_v45 = vpop.xlane.xlu0 %1433  ;;  %3606 = vrcp.f32 %v1413_v25 }
 0x64c   : > { %v1437_v59 = vpop.xlane.xlu1 %1436 }
 0x64d   : > { %v1404_v0 = vpop.xlane.xlu0 %1403 }
 0x64e   : > { %3608 = vrcp.f32 %v1404_v0 }
 0x650   : > { %v1407_v11 = vpop.xlane.xlu1 %1406 }
 0x651   : > { %v1428_v48 = vpop.xlane.xlu0 %1427  ;;  %3610 = vrcp.f32 %v1407_v11 }
 0x652   : > { %3612 = vrcp.f32 %v1410_v20 }
 0x653   : > { %3614 = vrcp.f32 %v1437_v59 }
 0x654   : > { %v1431_v49 = vpop.xlane.xlu1 %1430  ;;  %3616 = vrcp.f32 %v1428_v48 }
 0x655   : > { %v1422_v7 = vpop.xlane.xlu0 %1421  ;;  %3618 = vrcp.f32 %v1431_v49 }
 0x656   : > { %3620 = vrcp.f32 %v1434_v45  ;;  %v3607_v16 = vpop.eup %3606 }
 0x658   : > { %v1425_v6 = vpop.xlane.xlu1 %1424 }
 0x659   : > { %3622 = vrcp.f32 %v1425_v6 }
 0x65b   : > { %v3609_v46 = vpop.eup %3608 }
 0x65c   : > { %v1419_v60 = vpop.xlane.xlu1 %1418 }
 0x65d   : > { %v1416_v9 = vpop.xlane.xlu0 %1415  ;;  %3624 = vrcp.f32 %v1419_v60 }
 0x65e   : > { %v3611_v5 = vpop.eup %3610  ;;  %3626 = vrcp.f32 %v1416_v9 }
 0x65f   : > { %v3613_v42 = vpop.eup %3612  ;;  %3628 = vrcp.f32 %v1422_v7 }
 0x660   : > { %v1443_v10 = vpop.xlane.xlu1 %1442  ;;  %v3615_v34 = vpop.eup %3614 }
 0x661   : > { %v1440_v40 = vpop.xlane.xlu0 %1439  ;;  %3630 = vrcp.f32 %v1443_v10  ;;  %v3617_v52 = vpop.eup %3616 }
 0x662   : > { %v3619_v36 = vpop.eup %3618 }
 0x663   : > { %v3621_v56 = vpop.eup %3620 }
 0x665   : > { %v4354_v63 = vpop.xlane.xlu0 %1457 }
 0x666   : > { %v3623_v61 = vpop.eup %3622 }
 0x669   : > { %v1452_v14 = vpop.xlane.xlu0 %1451 }
 0x66a   : > { %v3625_v29 = vpop.eup %3624 }
 0x66b   : > { %v3627_v50 = vpop.eup %3626 }
 0x66c   : > { %v4352_v8 = vpop.xlane.xlu1 %1460  ;;  %v3629_v54 = vpop.eup %3628 }
 0x66d   : > { %v1446_v12 = vpop.xlane.xlu0 %1445 }
 0x66e   : > { %v3631_v20 = vpop.eup %3630 }
 0x670   : > { %v4356_v15 = vpop.xlane.xlu1 %1454 }
 0x674   : > { %v1449_v37 = vpop.xlane.xlu1 %1448 }
 0x675   : > { %3632 = vrcp.f32 %v1449_v37 }
 0x676   : > { %3634 = vrcp.f32 %v1440_v40 }
 0x677   : > { %3636 = vrcp.f32 %v1446_v12 }
 0x678   : > { %3638 = vrcp.f32 %v1452_v14 }
 0x679   : > { %3640 = vrcp.f32 %v4352_v8 }
 0x67a   : > { %3642 = vrcp.f32 %v4356_v15 }
 0x67b   : > { %3644 = vrcp.f32 %v4354_v63 }
 0x680   : > { %v1467_v40 = vpop.xlane.xlu1 %1466 }
 0x682   : > { %v3633_v45 = vpop.eup %3632 }
 0x683   : > { %v3635_v11 = vpop.eup %3634 }
 0x684   : > { %v3637_v48 = vpop.eup %3636 }
 0x689   : > { %v3275_v35 = vpop.f32.mrf.mxu0 }
 0x68a   : > { %v1888_v44 = vmul.f32 %v3613_v42, %v3275_v35  ;;  %v1464_v35 = vpop.xlane.xlu0 %1463 }
 0x68b   : > { %v1669_v43 = vpop.f32.mrf.mxu0  ;;  %3646 = vrcp.f32 %v1464_v35 }
 0x68c   : > { %v1886_v27 = vmul.f32 %v3609_v46, %v1669_v43  ;;  %v3639_v46 = vpop.eup %3638 }
 0x68d   : > { %v3276_v2 = vpop.f32.mrf.mxu0 }
 0x68e   : > { %v1889_v47 = vmul.f32 %v3607_v16, %v3276_v2  ;;  %v1473_v16 = vpop.xlane.xlu1 %1472  ;;  %v1470_v8 = vpop.xlane.xlu0 %1469 }
 0x68f   : > { %v1672_v23 = vpop.f32.mrf.mxu0  ;;  %3648 = vrcp.f32 %v1473_v16 }
 0x690   : > { %v1887_v22 = vmul.f32 %v3611_v5, %v1672_v23  ;;  %v3291_v53 = vpop.f32.mrf.mxu1  ;;  %v1915_v31 = vpack.c.bf16 %v1889_v47, %v1888_v44  ;;  %v3641_v5 = vpop.eup %3640  ;;  %3650 = vrcp.f32 %v1467_v40 }
 0x691   : > { %v1896_v28 = vmul.f32 %v3621_v56, %v3291_v53  ;;  %v3643_v15 = vpop.eup %3642  ;;  %3652 = vrcp.f32 %v1470_v8 }
 0x692   : > { %v1914_v17 = vpack.c.bf16 %v1887_v22, %v1886_v27  ;;  %v1758_v24 = vpop.f32.mrf.mxu1  ;;  %v3645_v23 = vpop.eup %3644 }
 0x693   : > { %v1894_v55 = vmul.f32 %v3617_v52, %v1758_v24 }
 0x694   : > { %v3292_v38 = vpop.f32.mrf.mxu1  ;;  %3325 = vmatprep.mubr.msk.bf16.mxu0 %vm792_vm1, %v1914_v17 }
 0x695   : > { %3326 = vmatmul.mubr.msk.bf16.vlgmr.msra.gmra.mxu0 %vm792_vm1, %v1915_v31  ;;  %v1897_v41 = vmul.f32 %v3615_v34, %v3292_v38 }
 0x696   : > { %v3279_v3 = vpop.f32.mrf.mxu0  ;;  %v1761_v21 = vpop.f32.mrf.mxu1  ;;  %3344 = vmatpush3.bf16.msra.mxu0 %v2184_v13 }
 0x697   : > { %v1895_v18 = vmul.f32 %v3619_v36, %v1761_v21  ;;  %v1919_v26 = vpack.c.bf16 %v1897_v41, %v1896_v28  ;;  %v1892_v1 = vmul.f32 %v3629_v54, %v3279_v3 }
 0x698   : > { %v1685_v19 = vpop.f32.mrf.mxu0  ;;  %v3647_v24 = vpop.eup %3646 }
 0x699   : > { %v1918_v33 = vpack.c.bf16 %v1895_v18, %v1894_v55  ;;  %v1890_v30 = vmul.f32 %v3627_v50, %v1685_v19 }
 0x69a   : > { %v3280_v62 = vpop.f32.mrf.mxu0 }
 0x69b   : > { %3335 = vmatprep.mubr.msk.bf16.mxu1 %vm792_vm1, %v1918_v33  ;;  %v1893_v4 = vmul.f32 %v3623_v61, %v3280_v62 }
 0x69c   : > { %v1688_v51 = vpop.f32.mrf.mxu0  ;;  %3336 = vmatmul.mubr.msk.bf16.vlgmr.msra.gmra.mxu1 %vm792_vm1, %v1919_v26  ;;  %v3649_v13 = vpop.eup %3648 }
 0x69d   : > { %v1891_v32 = vmul.f32 %v3625_v29, %v1688_v51  ;;  %v3295_v57 = vpop.f32.mrf.mxu1  ;;  %v1917_v25 = vpack.c.bf16 %v1893_v4, %v1892_v1  ;;  %v3651_v34 = vpop.eup %3650 }
 0x69e   : > { %v1900_v60 = vmul.f32 %v3637_v48, %v3295_v57  ;;  %v3653_v52 = vpop.eup %3652 }
 0x69f   : > { %v1916_v58 = vpack.c.bf16 %v1891_v32, %v1890_v30  ;;  %v1774_v39 = vpop.f32.mrf.mxu1 }
 0x6a0   : > { %v1898_v6 = vmul.f32 %v3635_v11, %v1774_v39 }
 0x6a1   : > { %v3296_v59 = vpop.f32.mrf.mxu1  ;;  %3329 = vmatprep.mubr.msk.bf16.mxu0 %vm792_vm1, %v1916_v58 }
 0x6a2   : > { %3330 = vmatmul.mubr.msk.bf16.gmra.mxu0 %vm792_vm1, %v1917_v25  ;;  %v1901_v0 = vmul.f32 %v3633_v45, %v3296_v59 }
 0x6a3   : > { %v1777_v49 = vpop.f32.mrf.mxu1 }
 0x6a4   : > { %v1899_v7 = vmul.f32 %v3631_v20, %v1777_v49  ;;  %v1921_v10 = vpack.c.bf16 %v1901_v0, %v1900_v60 }
 0x6a6   : > { %v1920_v9 = vpack.c.bf16 %v1899_v7, %v1898_v6 }
 0x6a8   : > { %3339 = vmatprep.mubr.msk.bf16.mxu1 %vm792_vm1, %v1920_v9 }
 0x6a9   : > { %3340 = vmatmul.mubr.msk.bf16.gmra.mxu1 %vm792_vm1, %v1921_v10 }
 0x6ac   : > { %v3307_v43 = vpop.f32.mrf.mxu0 }
 0x6ad   : > { %v1904_v22 = vmul.f32 %v3645_v23, %v3307_v43 }
 0x6ae   : > { %v1847_v2 = vpop.f32.mrf.mxu0 }
 0x6af   : > { %v1902_v42 = vmul.f32 %v3639_v46, %v1847_v2 }
 0x6b0   : > { %v3308_v14 = vpop.f32.mrf.mxu0 }
 0x6b1   : > { %v1905_v63 = vmul.f32 %v3641_v5, %v3308_v14 }
 0x6b2   : > { %v1850_v47 = vpop.f32.mrf.mxu0 }
 0x6b3   : > { %v1903_v27 = vmul.f32 %v3643_v15, %v1850_v47  ;;  %v1923_v44 = vpack.c.bf16 %v1905_v63, %v1904_v22 }
 0x6b5   : > { %v1922_v53 = vpack.c.bf16 %v1903_v27, %v1902_v42 }
 0x6b7   : > { %3345 = vmatprep.mubr.msk.bf16.mxu0 %vm792_vm1, %v1922_v53 }
 0x6b8   : > { %3346 = vmatmul.mubr.msk.bf16.vlgmr.msra.gmra.mxu0 %vm792_vm1, %v1923_v44 }
 0x6b9   : > { %v3311_v37 = vpop.f32.mrf.mxu0 }
 0x6ba   : > { %v1908_v3 = vmul.f32 %v3653_v52, %v3311_v37  ;;  %v3702_v37 = vld [vmem:[%s3784_s11 + $0x10] sm:$0xff] }
 0x6bb   : > { %v1863_v17 = vpop.f32.mrf.mxu0 }
 0x6bc   : > { %v1906_v36 = vmul.f32 %v3647_v24, %v1863_v17  ;;  %v3703_v24 = vld [vmem:[%s3784_s11] sm:$0xff] }
 0x6bd   : > { %v3312_v31 = vpop.f32.mrf.mxu0 }
 0x6be   : > { %v1909_v12 = vmul.f32 %v3649_v13, %v3312_v31 }
 0x6bf   : > { %v1866_v38 = vpop.f32.mrf.mxu0 }
 0x6c0   : > { %v1907_v41 = vmul.f32 %v3651_v34, %v1866_v38  ;;  %v1925_v56 = vpack.c.bf16 %v1909_v12, %v1908_v3  ;;  %v4401_v12 = vld [vmem:[%s4679_s1 + $0x4] ss:$0 sm:$0xff] }
 0x6c2   : > { %v1924_v21 = vpack.c.bf16 %v1907_v41, %v1906_v36 }
 0x6c4   : > { %3349 = vmatprep.mubr.msk.bf16.mxu0 %vm792_vm1, %v1924_v21 }
 0x6c5   : > { %3350 = vmatmul.mubr.msk.bf16.gmra.mxu0 %vm792_vm1, %v1925_v56 }
 0x6ed   : > { %v3317_v55 = vpop.f32.mrf.mxu1 }
 0x6ee   : > { %v2265_v25 = vsel %vm320_vm0, %v3317_v55, 0.0 }
 0x6ef   : > { %v1980_v18 = vpop.f32.mrf.mxu1 }
 0x6f0   : > { %v2251_v0 = vsel %vm320_vm0, %v1980_v18, 0.0 }
 0x6f1   : > { %v3318_v28 = vpop.f32.mrf.mxu1 }
 0x6f2   : > { %v2272_v10 = vsel %vm320_vm0, %v3318_v28, 0.0  ;;  %v3704_v28 = vld [vmem:[%s3784_s11 + $0x18] sm:$0xff] }
 0x6f3   : > { %v1983_v19 = vpop.f32.mrf.mxu1 }
 0x6f4   : > { %v2258_v5 = vsel %vm320_vm0, %v1983_v19, 0.0 }
 0x6f7   : > { %v3321_v61 = vpop.f32.mrf.mxu1 }
 0x6f8   : > { %v2293_v3 = vsel %vm320_vm0, %v3321_v61, 0.0 }
 0x6f9   : > { %v4375_v62 = vpop.f32.mrf.mxu1 }
 0x6fb   : > { %v4377_v50 = vpop.f32.mrf.mxu1 }
 0x6fc   : > { %v2300_v61 = vsel %vm320_vm0, %v4377_v50, 0.0 }
 0x6fd   : > { %v4379_v51 = vpop.f32.mrf.mxu1 }
 0x755   : > { %v3327_v33 = vpop.f32.mrf.mxu0 }
 0x756   : > { %v2266_v58 = vsel %vm320_vm0, %v3327_v33, 0.0  ;;  %v3705_v33 = vld [vmem:[%s3784_s11 + $0x8] sm:$0xff] }
 0x757   : > { %v2060_v26 = vpop.f32.mrf.mxu0  ;;  %v2267_v45 = vadd.f32 %v2266_v58, %v2265_v25 }
 0x758   : > { %v2252_v20 = vsel %vm320_vm0, %v2060_v26, 0.0 }
 0x759   : > { %v3328_v29 = vpop.f32.mrf.mxu0  ;;  %v2253_v7 = vadd.f32 %v2252_v20, %v2251_v0 }
 0x75a   : > { %v2273_v49 = vsel %vm320_vm0, %v3328_v29, 0.0 }
 0x75b   : > { %v2063_v4 = vpop.f32.mrf.mxu0  ;;  %v2274_v2 = vadd.f32 %v2273_v49, %v2272_v10 }
 0x75c   : > { %v3337_v30 = vpop.f32.mrf.mxu1  ;;  %v2259_v40 = vsel %vm320_vm0, %v2063_v4, 0.0  ;;  %v2279_v4 = vsel %vm320_vm0, %v4375_v62, 0.0 }
 0x75d   : > { %v2268_v59 = vsel %vm320_vm0, %v3337_v30, 0.0  ;;  %v2260_v47 = vadd.f32 %v2259_v40, %v2258_v5  ;;  %v3707_v5 = vld [vmem:[%s3784_s11 + $0x20] sm:$0xff] }
 0x75e   : > { %v2140_v57 = vpop.f32.mrf.mxu1  ;;  %v2269_v60 = vadd.f32 %v2268_v59, %v2267_v45 }
 0x75f   : > { %v2254_v48 = vsel %vm320_vm0, %v2140_v57, 0.0 }
 0x760   : > { %v3338_v39 = vpop.f32.mrf.mxu1  ;;  %v2255_v46 = vadd.f32 %v2254_v48, %v2253_v7  ;;  %v2286_v7 = vsel %vm320_vm0, %v4379_v51, 0.0 }
 0x761   : > { %v2275_v35 = vsel %vm320_vm0, %v3338_v39, 0.0 }
 0x762   : > { %v3331_v54 = vpop.f32.mrf.mxu0  ;;  %v2143_v6 = vpop.f32.mrf.mxu1  ;;  %v2276_v23 = vadd.f32 %v2275_v35, %v2274_v2 }
 0x763   : > { %v2261_v15 = vsel %vm320_vm0, %v2143_v6, 0.0  ;;  %v2294_v52 = vsel %vm320_vm0, %v3331_v54, 0.0 }
 0x764   : > { %v2076_v32 = vpop.f32.mrf.mxu0  ;;  %v2262_v44 = vadd.f32 %v2261_v15, %v2260_v47  ;;  %v2295_v54 = vadd.f32 %v2294_v52, %v2293_v3 }
 0x765   : > { %v2280_v21 = vsel %vm320_vm0, %v2076_v32, 0.0 }
 0x766   : > { %v3332_v1 = vpop.f32.mrf.mxu0  ;;  %v2281_v58 = vadd.f32 %v2280_v21, %v2279_v4 }
 0x767   : > { %v2301_v30 = vsel %vm320_vm0, %v3332_v1, 0.0 }
 0x768   : > { %v2079_v11 = vpop.f32.mrf.mxu0  ;;  %v2302_v49 = vadd.f32 %v2301_v30, %v2300_v61 }
 0x769   : > { %v3341_v43 = vpop.f32.mrf.mxu1  ;;  %v2287_v39 = vsel %vm320_vm0, %v2079_v11, 0.0 }
 0x76a   : > { %v2296_v56 = vsel %vm320_vm0, %v3341_v43, 0.0  ;;  %v2288_v10 = vadd.f32 %v2287_v39, %v2286_v7 }
 0x76b   : > { %v2156_v22 = vpop.f32.mrf.mxu1  ;;  %v2297_v25 = vadd.f32 %v2296_v56, %v2295_v54 }
 0x76c   : > { %v2282_v32 = vsel %vm320_vm0, %v2156_v22, 0.0  ;;  %v3708_v22 = vld [vmem:[%s3784_s11 + $0x38] sm:$0xff] }
 0x76d   : > { %v3342_v55 = vpop.f32.mrf.mxu1  ;;  %v2283_v48 = vadd.f32 %v2282_v32, %v2281_v58 }
 0x76e   : > { %v2303_v20 = vsel %vm320_vm0, %v3342_v55, 0.0 }
 0x76f   : > { %v2159_v59 = vpop.f32.mrf.mxu1  ;;  %v2304_v40 = vadd.f32 %v2303_v20, %v2302_v49 }
 0x778   : > { %v3347_v9 = vpop.f32.mrf.mxu0 }
 0x779   : > { %v2270_v16 = vsel %vm320_vm0, %v3347_v9, 0.0 }
 0x77a   : > { %v2271_v8 = vadd.f32 %v2270_v16, %v2269_v60  ;;  %v2220_v14 = vpop.f32.mrf.mxu0  ;;  %v2289_v60 = vsel %vm320_vm0, %v2159_v59, 0.0 }
 0x77b   : > { %v2256_v63 = vsel %vm320_vm0, %v2220_v14, 0.0 }
 0x77c   : > { %v2257_v42 = vadd.f32 %v2256_v63, %v2255_v46  ;;  %v3348_v27 = vpop.f32.mrf.mxu0  ;;  %v2309_v17 = vadd.f32 %v3702_v37, %v2271_v8  ;;  %v2290_v46 = vadd.f32 %v2289_v60, %v2288_v10  ;;  %v3706_v8 = vld [vmem:[%s3784_s11 + $0x30] sm:$0xff] }
 0x77d   : > { %v2277_v53 = vsel %vm320_vm0, %v3348_v27, 0.0 }
 0x77e   : > { %v2307_v31 = vadd.f32 %v3703_v24, %v2257_v42  ;;  %v2278_v13 = vadd.f32 %v2277_v53, %v2276_v23  ;;  %v2223_v34 = vpop.f32.mrf.mxu0  ;;  %v4412_v18 = vadd.f32 %v4401_v12, %v2309_v17 }
 0x77f   : > { %v2263_v38 = vsel %vm320_vm0, %v2223_v34, 0.0 }
 0x780   : > { %v4406_v36 = vadd.f32 %v4401_v12, %v2307_v31  ;;  %v2264_v41 = vadd.f32 %v2263_v38, %v2262_v44  ;;  %v2310_v19 = vadd.f32 %v3704_v28, %v2278_v13  ;;  %v2336_v1 = vsel %vm320_vm0, %v4412_v18, 0.0  ;;  %v3709_v44 = vld [vmem:[%s3784_s11 + $0x28] sm:$0xff] }
 0x782   : > { %v2308_v26 = vadd.f32 %v3705_v33, %v2264_v41  ;;  %v2330_v29 = vsel %vm320_vm0, %v4406_v36, 0.0  ;;  %v4430_v45 = vadd.f32 %v4401_v12, %v2310_v19 }
 0x783   : > { %2331 = vadd.xlane.f32.xlu0 %v2330_v29 }
 0x784   : > { %v4425_v57 = vadd.f32 %v4401_v12, %v2308_v26  ;;  %v2339_v2 = vsel %vm320_vm0, %v4430_v45, 0.0 }
 0x785   : > { %v3351_v62 = vpop.f32.mrf.mxu0 }
 0x786   : > { %v2298_v50 = vsel %vm320_vm0, %v3351_v62, 0.0  ;;  %v2333_v0 = vsel %vm320_vm0, %v4425_v57, 0.0 }
 0x787   : > { %v2299_v11 = vadd.f32 %v2298_v50, %v2297_v25  ;;  %2337 = vadd.xlane.f32.xlu0 %v2336_v1  ;;  %2334 = vadd.xlane.f32.xlu1 %v2333_v0  ;;  %v2236_v6 = vpop.f32.mrf.mxu0 }
 0x788   : > { %v2284_v9 = vsel %vm320_vm0, %v2236_v6, 0.0 }
 0x789   : > { %v2285_v35 = vadd.f32 %v2284_v9, %v2283_v48  ;;  %v3352_v43 = vpop.f32.mrf.mxu0  ;;  %v2313_v14 = vadd.f32 %v3706_v8, %v2299_v11 }
 0x78a   : > { %v2305_v16 = vsel %vm320_vm0, %v3352_v43, 0.0 }
 0x78b   : > { %v2311_v51 = vadd.f32 %v3707_v5, %v2285_v35  ;;  %v2306_v15 = vadd.f32 %v2305_v16, %v2304_v40  ;;  %2340 = vadd.xlane.f32.xlu1 %v2339_v2  ;;  %v2239_v63 = vpop.f32.mrf.mxu0  ;;  %v4451_v27 = vadd.f32 %v4401_v12, %v2313_v14 }
 0x78c   : > { %v2291_v47 = vsel %vm320_vm0, %v2239_v63, 0.0 }
 0x78d   : > { %v4448_v23 = vadd.f32 %v4401_v12, %v2311_v51  ;;  %v2292_v42 = vadd.f32 %v2291_v47, %v2290_v46  ;;  %v2314_v53 = vadd.f32 %v3708_v22, %v2306_v15  ;;  %v2348_v13 = vsel %vm320_vm0, %v4451_v27, 0.0 }
 0x78f   : > { %v2312_v37 = vadd.f32 %v3709_v44, %v2292_v42  ;;  %v2342_v17 = vsel %vm320_vm0, %v4448_v23, 0.0  ;;  %v4461_v31 = vadd.f32 %v4401_v12, %v2314_v53 }
 0x790   : > { %2343 = vadd.xlane.f32.xlu0 %v2342_v17 }
 0x791   : > { %v4458_v24 = vadd.f32 %v4401_v12, %v2312_v37  ;;  %v2351_v38 = vsel %vm320_vm0, %v4461_v31, 0.0 }
 0x793   : > { %v2345_v34 = vsel %vm320_vm0, %v4458_v24, 0.0 }
 0x794   : > { %2349 = vadd.xlane.f32.xlu0 %v2348_v13  ;;  %2346 = vadd.xlane.f32.xlu1 %v2345_v34 }
 0x798   : > { %2352 = vadd.xlane.f32.xlu1 %v2351_v38 }
 0x80c   : > { %v2332_v52 = vpop.xlane.xlu0 %2331 }
 0x80d   : > { %v2354_v41 = vmul.f32 0.03125, %v2332_v52 }
 0x80f   : > { %v4470_v3 = vsub.f32 %v4406_v36, %v2354_v41 }
 0x810   : > { %v2335_v21 = vpop.xlane.xlu1 %2334  ;;  %v2338_v12 = vpop.xlane.xlu0 %2337 }
 0x811   : > { %v2355_v56 = vmul.f32 0.03125, %v2335_v21  ;;  %v2356_v55 = vmul.f32 0.03125, %v2338_v12  ;;  %v2370_v28 = vmul.f32 %v4470_v3, %v4470_v3 }
 0x813   : > { %v4475_v19 = vsub.f32 %v4425_v57, %v2355_v56  ;;  %v4478_v33 = vsub.f32 %v4412_v18, %v2356_v55  ;;  %v2378_v26 = vsel %vm320_vm0, %v2370_v28, 0.0  ;;  %v3043_v56 = vld [vmem:[%s4679_s1 + $0x5] ss:$0 sm:$0xff] }
 0x814   : > { %v2341_v29 = vpop.xlane.xlu1 %2340  ;;  %2379 = vadd.xlane.f32.xlu0 %v2378_v26 }
 0x815   : > { %v2357_v4 = vmul.f32 0.03125, %v2341_v29  ;;  %v2371_v54 = vmul.f32 %v4475_v19, %v4475_v19  ;;  %v2372_v61 = vmul.f32 %v4478_v33, %v4478_v33  ;;  %v3044_v29 = vld [vmem:[%s4679_s1 + $0x6] ss:$0 sm:$0xff] }
 0x817   : > { %v4486_v30 = vsub.f32 %v4430_v45, %v2357_v4  ;;  %v2381_v32 = vsel %vm320_vm0, %v2371_v54, 0.0  ;;  %v2384_v58 = vsel %vm320_vm0, %v2372_v61, 0.0 }
 0x818   : > { %2382 = vadd.xlane.f32.xlu1 %v2381_v32  ;;  %2385 = vadd.xlane.f32.xlu0 %v2384_v58 }
 0x819   : > { %v2344_v39 = vpop.xlane.xlu0 %2343  ;;  %v2373_v25 = vmul.f32 %v4486_v30, %v4486_v30 }
 0x81a   : > { %v2358_v20 = vmul.f32 0.03125, %v2344_v39 }
 0x81b   : > { %v2387_v59 = vsel %vm320_vm0, %v2373_v25, 0.0 }
 0x81c   : > { %v4494_v62 = vsub.f32 %v4448_v23, %v2358_v20  ;;  %2388 = vadd.xlane.f32.xlu1 %v2387_v59 }
 0x81d   : > { %v2347_v50 = vpop.xlane.xlu1 %2346  ;;  %v2350_v1 = vpop.xlane.xlu0 %2349 }
 0x81e   : > { %v2359_v0 = vmul.f32 0.03125, %v2347_v50  ;;  %v2360_v49 = vmul.f32 0.03125, %v2350_v1  ;;  %v2374_v48 = vmul.f32 %v4494_v62, %v4494_v62 }
 0x820   : > { %v4499_v11 = vsub.f32 %v4458_v24, %v2359_v0  ;;  %v4502_v6 = vsub.f32 %v4451_v27, %v2360_v49  ;;  %v2390_v7 = vsel %vm320_vm0, %v2374_v48, 0.0 }
 0x821   : > { %v2353_v60 = vpop.xlane.xlu1 %2352  ;;  %2391 = vadd.xlane.f32.xlu0 %v2390_v7 }
 0x822   : > { %v2361_v9 = vmul.f32 0.03125, %v2353_v60  ;;  %v2375_v10 = vmul.f32 %v4499_v11, %v4499_v11  ;;  %v2376_v40 = vmul.f32 %v4502_v6, %v4502_v6 }
 0x824   : > { %v4510_v35 = vsub.f32 %v4461_v31, %v2361_v9  ;;  %v2393_v43 = vsel %vm320_vm0, %v2375_v10, 0.0  ;;  %v2396_v16 = vsel %vm320_vm0, %v2376_v40, 0.0 }
 0x825   : > { %2394 = vadd.xlane.f32.xlu1 %v2393_v43  ;;  %2397 = vadd.xlane.f32.xlu0 %v2396_v16 }
 0x826   : > { %v2377_v2 = vmul.f32 %v4510_v35, %v4510_v35 }
 0x828   : > { %v2399_v46 = vsel %vm320_vm0, %v2377_v2, 0.0 }
 0x829   : > { %2400 = vadd.xlane.f32.xlu1 %v2399_v46 }
 0x89d   : > { %v2380_v8 = vpop.xlane.xlu0 %2379 }
 0x89e   : > { %v2402_v14 = vmul.f32 0.03125, %v2380_v8 }
 0x8a0   : > { %v2410_v5 = vadd.f32 1e-06, %v2402_v14 }
 0x8a1   : > { %v2383_v51 = vpop.xlane.xlu1 %2382  ;;  %v2386_v15 = vpop.xlane.xlu0 %2385 }
 0x8a2   : > { %3654 = vrsqrt.f32 %v2410_v5  ;;  %v2403_v63 = vmul.f32 0.03125, %v2383_v51  ;;  %v2404_v47 = vmul.f32 0.03125, %v2386_v15 }
 0x8a4   : > { %v2411_v42 = vadd.f32 1e-06, %v2403_v63  ;;  %v2412_v22 = vadd.f32 1e-06, %v2404_v47 }
 0x8a5   : > { %v2389_v53 = vpop.xlane.xlu1 %2388 }
 0x8a6   : > { %3656 = vrsqrt.f32 %v2411_v42  ;;  %v2405_v44 = vmul.f32 0.03125, %v2389_v53 }
 0x8a7   : > { %3658 = vrsqrt.f32 %v2412_v22 }
 0x8a8   : > { %v2413_v37 = vadd.f32 1e-06, %v2405_v44 }
 0x8aa   : > { %3660 = vrsqrt.f32 %v2413_v37  ;;  %v2392_v17 = vpop.xlane.xlu0 %2391 }
 0x8ab   : > { %v2406_v13 = vmul.f32 0.03125, %v2392_v17 }
 0x8ad   : > { %v2414_v34 = vadd.f32 1e-06, %v2406_v13 }
 0x8ae   : > { %v2395_v38 = vpop.xlane.xlu1 %2394  ;;  %v2398_v52 = vpop.xlane.xlu0 %2397 }
 0x8af   : > { %v3655_v41 = vpop.eup %3654  ;;  %3662 = vrsqrt.f32 %v2414_v34  ;;  %v2407_v21 = vmul.f32 0.03125, %v2395_v38  ;;  %v2408_v12 = vmul.f32 0.03125, %v2398_v52 }
 0x8b0   : > { %v2426_v55 = vmul.f32 %v3655_v41, %v4470_v3 }
 0x8b1   : > { %v2415_v28 = vadd.f32 1e-06, %v2407_v21  ;;  %v2416_v26 = vadd.f32 1e-06, %v2408_v12 }
 0x8b2   : > { %v2401_v4 = vpop.xlane.xlu1 %2400  ;;  %v2438_v54 = vmul.f32 %v3043_v56, %v2426_v55 }
 0x8b3   : > { %v3657_v61 = vpop.eup %3656  ;;  %3664 = vrsqrt.f32 %v2415_v28  ;;  %v2409_v32 = vmul.f32 0.03125, %v2401_v4 }
 0x8b4   : > { %v3659_v58 = vpop.eup %3658  ;;  %3666 = vrsqrt.f32 %v2416_v26  ;;  %v2450_v39 = vadd.f32 %v3044_v29, %v2438_v54  ;;  %v2427_v25 = vmul.f32 %v3657_v61, %v4475_v19 }
 0x8b5   : > { %v2417_v20 = vadd.f32 1e-06, %v2409_v32  ;;  %v2428_v59 = vmul.f32 %v3659_v58, %v4478_v33 }
 0x8b6   : > { %v2460_v3 = vsel %vm320_vm0, %v2450_v39, 0.0  ;;  %v2439_v50 = vmul.f32 %v3043_v56, %v2427_v25 }
 0x8b7   : > { %v3661_v1 = vpop.eup %3660  ;;  %3668 = vrsqrt.f32 %v2417_v20  ;;  %2461 = vadd.xlane.f32.xlu0 %v2460_v3  ;;  %v2440_v0 = vmul.f32 %v3043_v56, %v2428_v59 }
 0x8b8   : > { %v2451_v49 = vadd.f32 %v3044_v29, %v2439_v50  ;;  %v2429_v48 = vmul.f32 %v3661_v1, %v4486_v30 }
 0x8b9   : > { %v2452_v7 = vadd.f32 %v3044_v29, %v2440_v0 }
 0x8ba   : > { %v2463_v60 = vsel %vm320_vm0, %v2451_v49, 0.0  ;;  %v2441_v9 = vmul.f32 %v3043_v56, %v2429_v48 }
 0x8bb   : > { %2464 = vadd.xlane.f32.xlu1 %v2463_v60  ;;  %v2466_v19 = vsel %vm320_vm0, %v2452_v7, 0.0 }
 0x8bc   : > { %v3663_v10 = vpop.eup %3662  ;;  %2467 = vadd.xlane.f32.xlu0 %v2466_v19  ;;  %v2453_v33 = vadd.f32 %v3044_v29, %v2441_v9 }
 0x8bd   : > { %v2430_v40 = vmul.f32 %v3663_v10, %v4494_v62 }
 0x8be   : > { %v2469_v43 = vsel %vm320_vm0, %v2453_v33, 0.0 }
 0x8bf   : > { %2470 = vadd.xlane.f32.xlu1 %v2469_v43  ;;  %v2442_v16 = vmul.f32 %v3043_v56, %v2430_v40 }
 0x8c0   : > { %v3665_v2 = vpop.eup %3664 }
 0x8c1   : > { %v3667_v46 = vpop.eup %3666  ;;  %v2454_v8 = vadd.f32 %v3044_v29, %v2442_v16  ;;  %v2431_v30 = vmul.f32 %v3665_v2, %v4499_v11 }
 0x8c2   : > { %v2432_v14 = vmul.f32 %v3667_v46, %v4502_v6  ;;  %v3484_v46 = vld [vmem:[%s4684_s6 + $0x8] sm:$0xff]  }
 0x8c3   : > { %v2472_v5 = vsel %vm320_vm0, %v2454_v8, 0.0  ;;  %v2443_v51 = vmul.f32 %v3043_v56, %v2431_v30  ;;  %3353 = vmatprep.subr.bf16.mxu1 %v3484_v46 }
 0x8c4   : > { %v3669_v15 = vpop.eup %3668  ;;  %2473 = vadd.xlane.f32.xlu0 %v2472_v5  ;;  %v2444_v63 = vmul.f32 %v3043_v56, %v2432_v14  ;;  %3354 = vmatpush3.bf16.msra.mxu1 %v3484_v46 }
 0x8c5   : > { %v2455_v47 = vadd.f32 %v3044_v29, %v2443_v51  ;;  %v2433_v62 = vmul.f32 %v3669_v15, %v4510_v35 }
 0x8c6   : > { %v2456_v42 = vadd.f32 %v3044_v29, %v2444_v63 }
 0x8c7   : > { %v2475_v22 = vsel %vm320_vm0, %v2455_v47, 0.0  ;;  %v2445_v53 = vmul.f32 %v3043_v56, %v2433_v62 }
 0x8c8   : > { %2476 = vadd.xlane.f32.xlu1 %v2475_v22  ;;  %v2478_v44 = vsel %vm320_vm0, %v2456_v42, 0.0 }
 0x8c9   : > { %2479 = vadd.xlane.f32.xlu0 %v2478_v44  ;;  %v2457_v11 = vadd.f32 %v3044_v29, %v2445_v53 }
 0x8cb   : > { %v2481_v6 = vsel %vm320_vm0, %v2457_v11, 0.0 }
 0x8cc   : > { %2482 = vadd.xlane.f32.xlu1 %v2481_v6 }
 0x940   : > { %v2462_v37 = vpop.xlane.xlu0 %2461 }
 0x941   : > { %v2484_v17 = vmul.f32 0.03125, %v2462_v37 }
 0x943   : > { %v4539_v13 = vsub.f32 %v2450_v39, %v2484_v17 }
 0x944   : > { %v2465_v34 = vpop.xlane.xlu1 %2464 }
 0x945   : > { %v2485_v38 = vmul.f32 0.03125, %v2465_v34  ;;  %v2468_v52 = vpop.xlane.xlu0 %2467  ;;  %v2500_v35 = vmul.f32 %v4539_v13, %v4539_v13 }
 0x946   : > { %v2486_v41 = vmul.f32 0.03125, %v2468_v52 }
 0x947   : > { %v4543_v21 = vsub.f32 %v2451_v49, %v2485_v38  ;;  %v2508_v12 = vsel %vm320_vm0, %v2500_v35, 0.0 }
 0x948   : > { %v4546_v56 = vsub.f32 %v2452_v7, %v2486_v41  ;;  %v2471_v55 = vpop.xlane.xlu1 %2470  ;;  %2509 = vadd.xlane.f32.xlu0 %v2508_v12  ;;  %v3045_v12 = vld [vmem:[%s4679_s1 + $0x7] ss:$0 sm:$0xff] }
 0x949   : > { %v2487_v28 = vmul.f32 0.03125, %v2471_v55  ;;  %v2501_v26 = vmul.f32 %v4543_v21, %v4543_v21 }
 0x94a   : > { %v2502_v29 = vmul.f32 %v4546_v56, %v4546_v56 }
 0x94b   : > { %v4552_v4 = vsub.f32 %v2453_v33, %v2487_v28  ;;  %v2511_v54 = vsel %vm320_vm0, %v2501_v26, 0.0 }
 0x94c   : > { %2512 = vadd.xlane.f32.xlu1 %v2511_v54  ;;  %v2514_v61 = vsel %vm320_vm0, %v2502_v29, 0.0 }
 0x94d   : > { %2515 = vadd.xlane.f32.xlu0 %v2514_v61  ;;  %v2474_v32 = vpop.xlane.xlu0 %2473  ;;  %v2503_v58 = vmul.f32 %v4552_v4, %v4552_v4 }
 0x94e   : > { %v2488_v39 = vmul.f32 0.03125, %v2474_v32 }
 0x94f   : > { %v2517_v25 = vsel %vm320_vm0, %v2503_v58, 0.0 }
 0x950   : > { %v4559_v20 = vsub.f32 %v2454_v8, %v2488_v39  ;;  %2518 = vadd.xlane.f32.xlu1 %v2517_v25  ;;  %v3485_v8 = vld [vmem:[%s4684_s6] sm:$0xff]  }
 0x951   : > { %v2477_v59 = vpop.xlane.xlu1 %2476  ;;  %3355 = vmatprep.subr.bf16.mxu1 %v3485_v8 }
 0x952   : > { %v2489_v3 = vmul.f32 0.03125, %v2477_v59  ;;  %v2480_v50 = vpop.xlane.xlu0 %2479  ;;  %v2504_v1 = vmul.f32 %v4559_v20, %v4559_v20  ;;  %3356 = vmatpush3.bf16.msra.mxu1 %v3485_v8 }
 0x953   : > { %v2490_v0 = vmul.f32 0.03125, %v2480_v50 }
 0x954   : > { %v4563_v49 = vsub.f32 %v2455_v47, %v2489_v3  ;;  %v2520_v48 = vsel %vm320_vm0, %v2504_v1, 0.0 }
 0x955   : > { %v4566_v7 = vsub.f32 %v2456_v42, %v2490_v0  ;;  %v2483_v60 = vpop.xlane.xlu1 %2482  ;;  %2521 = vadd.xlane.f32.xlu0 %v2520_v48 }
 0x956   : > { %v2491_v9 = vmul.f32 0.03125, %v2483_v60  ;;  %v2505_v19 = vmul.f32 %v4563_v49, %v4563_v49 }
 0x957   : > { %v2506_v10 = vmul.f32 %v4566_v7, %v4566_v7 }
 0x958   : > { %v4572_v33 = vsub.f32 %v2457_v11, %v2491_v9  ;;  %v2523_v40 = vsel %vm320_vm0, %v2505_v19, 0.0 }
 0x959   : > { %2524 = vadd.xlane.f32.xlu1 %v2523_v40  ;;  %v2526_v43 = vsel %vm320_vm0, %v2506_v10, 0.0 }
 0x95a   : > { %2527 = vadd.xlane.f32.xlu0 %v2526_v43  ;;  %v2507_v16 = vmul.f32 %v4572_v33, %v4572_v33 }
 0x95c   : > { %v2529_v2 = vsel %vm320_vm0, %v2507_v16, 0.0 }
 0x95d   : > { %2530 = vadd.xlane.f32.xlu1 %v2529_v2 }
 0x9d1   : > { %v2510_v30 = vpop.xlane.xlu0 %2509 }
 0x9d2   : > { %v2532_v14 = vmul.f32 0.03125, %v2510_v30 }
 0x9d4   : > { %v2540_v5 = vadd.f32 1e-06, %v2532_v14 }
 0x9d5   : > { %v2513_v51 = vpop.xlane.xlu1 %2512 }
 0x9d6   : > { %3670 = vrsqrt.f32 %v2540_v5  ;;  %v2533_v15 = vmul.f32 0.03125, %v2513_v51  ;;  %v2516_v63 = vpop.xlane.xlu0 %2515 }
 0x9d7   : > { %v2534_v47 = vmul.f32 0.03125, %v2516_v63 }
 0x9d8   : > { %v2541_v62 = vadd.f32 1e-06, %v2533_v15 }
 0x9d9   : > { %v2542_v42 = vadd.f32 1e-06, %v2534_v47  ;;  %v2519_v22 = vpop.xlane.xlu1 %2518 }
 0x9da   : > { %3672 = vrsqrt.f32 %v2541_v62  ;;  %v2535_v53 = vmul.f32 0.03125, %v2519_v22  ;;  %v3489_v22 = vld [vmem:[%s4685_s7 + $0x20] sm:$0xff]  }
 0x9db   : > { %3674 = vrsqrt.f32 %v2542_v42 }
 0x9dc   : > { %v2543_v44 = vadd.f32 1e-06, %v2535_v53  ;;  %v3490_v53 = vld [vmem:[%s4685_s7 + $0x18] sm:$0xff]  }
 0x9de   : > { %3676 = vrsqrt.f32 %v2543_v44  ;;  %v2522_v11 = vpop.xlane.xlu0 %2521  ;;  %v3491_v44 = vld [vmem:[%s4685_s7 + $0x10] sm:$0xff]  }
 0x9df   : > { %v2536_v6 = vmul.f32 0.03125, %v2522_v11  ;;  %v3492_v11 = vld [vmem:[%s4685_s7 + $0x8] sm:$0xff]  }
 0x9e1   : > { %v2544_v37 = vadd.f32 1e-06, %v2536_v6  ;;  %v3493_v6 = vld [vmem:[%s4685_s7] sm:$0xff]  }
 0x9e2   : > { %v2525_v17 = vpop.xlane.xlu1 %2524 }
 0x9e3   : > { %v3671_v34 = vpop.eup %3670  ;;  %3678 = vrsqrt.f32 %v2544_v37  ;;  %v2537_v38 = vmul.f32 0.03125, %v2525_v17  ;;  %v2528_v52 = vpop.xlane.xlu0 %2527  ;;  %v3047_v37 = vld [vmem:[%s4681_s3] ss:$0 sm:$0xff] }
 0x9e4   : > { %v2538_v35 = vmul.f32 0.03125, %v2528_v52  ;;  %v2556_v41 = vmul.f32 %v3671_v34, %v4539_v13  ;;  %v3046_v13 = vld [vmem:[%s4679_s1 + $0x8] ss:$0 sm:$0xff] }
 0x9e5   : > { %v2545_v55 = vadd.f32 1e-06, %v2537_v38 }
 0x9e6   : > { %v2546_v28 = vadd.f32 1e-06, %v2538_v35  ;;  %v2531_v26 = vpop.xlane.xlu1 %2530  ;;  %v2568_v58 = vmul.f32 %v3045_v12, %v2556_v41 }
 0x9e7   : > { %v3673_v29 = vpop.eup %3672  ;;  %3680 = vrsqrt.f32 %v2545_v55  ;;  %v2539_v54 = vmul.f32 0.03125, %v2531_v26 }
 0x9e8   : > { %v3675_v61 = vpop.eup %3674  ;;  %3682 = vrsqrt.f32 %v2546_v28  ;;  %v2557_v32 = vmul.f32 %v3673_v29, %v4543_v21  ;;  %v2580_v0 = vadd.f32 %v3046_v13, %v2568_v58 }
 0x9e9   : > { %v2558_v39 = vmul.f32 %v3675_v61, %v4546_v56  ;;  %v2547_v25 = vadd.f32 1e-06, %v2539_v54 }
 0x9ea   : > { %v2569_v59 = vmul.f32 %v3045_v12, %v2557_v32 }
 0x9eb   : > { %v3677_v3 = vpop.eup %3676  ;;  %3684 = vrsqrt.f32 %v2547_v25  ;;  %v2570_v50 = vmul.f32 %v3045_v12, %v2558_v39 }
 0x9ec   : > { %v2559_v1 = vmul.f32 %v3677_v3, %v4552_v4  ;;  %v2581_v48 = vadd.f32 %v3046_v13, %v2569_v59 }
 0x9ed   : > { %v2582_v21 = vadd.f32 %v3046_v13, %v2570_v50 }
 0x9ee   : > { %v2571_v60 = vmul.f32 %v3045_v12, %v2559_v1  ;;  %v2588_v9 = vpack.c.bf16 %v2581_v48, %v2580_v0 }
 0x9f0   : > { %v3679_v19 = vpop.eup %3678  ;;  %3357 = vmatprep.mubr.msk.bf16.mxu1 %vm320_vm0, %v2588_v9  ;;  %v2583_v56 = vadd.f32 %v3046_v13, %v2571_v60 }
 0x9f1   : > { %v2560_v10 = vmul.f32 %v3679_v19, %v4559_v20 }
 0x9f2   : > { %v2589_v40 = vpack.c.bf16 %v2583_v56, %v2582_v21 }
 0x9f3   : > { %v2572_v46 = vmul.f32 %v3045_v12, %v2560_v10 }
 0x9f4   : > { %v3681_v43 = vpop.eup %3680  ;;  %3358 = vmatmul.mubr.msk.bf16.vlgmr.msra.gmra.mxu1 %vm320_vm0, %v2589_v40 }
 0x9f5   : > { %v3683_v16 = vpop.eup %3682  ;;  %v2561_v2 = vmul.f32 %v3681_v43, %v4563_v49  ;;  %v2584_v14 = vadd.f32 %v3046_v13, %v2572_v46  ;;  %v3486_v49 = vld [vmem:[%s4685_s7 + $0x38] sm:$0xff]  }
 0x9f6   : > { %v2562_v4 = vmul.f32 %v3683_v16, %v4566_v7  ;;  %3365 = vmatprep.subr.bf16.mxu0 %v3486_v49  ;;  %v3487_v7 = vld [vmem:[%s4685_s7 + $0x30] sm:$0xff]  }
 0x9f7   : > { %v2573_v8 = vmul.f32 %v3045_v12, %v2561_v2  ;;  %3366 = vmatpush3.bf16.msra.mxu0 %v3486_v49 }
 0x9f8   : > { %v3685_v30 = vpop.eup %3684  ;;  %v2574_v15 = vmul.f32 %v3045_v12, %v2562_v4  ;;  %3367 = vmatprep.subr.bf16.mxu0 %v3487_v7 }
 0x9f9   : > { %v2585_v5 = vadd.f32 %v3046_v13, %v2573_v8  ;;  %v2563_v51 = vmul.f32 %v3685_v30, %v4572_v33  ;;  %v3488_v33 = vld [vmem:[%s4685_s7 + $0x28] sm:$0xff]  }
 0x9fa   : > { %v2586_v20 = vadd.f32 %v3046_v13, %v2574_v15 }
 0x9fb   : > { %v2590_v63 = vpack.c.bf16 %v2585_v5, %v2584_v14  ;;  %v2575_v47 = vmul.f32 %v3045_v12, %v2563_v51  ;;  %3368 = vmatpush3.bf16.msra.mxu0 %v3487_v7 }
 0x9fc   : > { %3369 = vmatprep.subr.bf16.mxu0 %v3488_v33 }
 0x9fd   : > { %3361 = vmatprep.mubr.msk.bf16.mxu1 %vm320_vm0, %v2590_v63  ;;  %v2587_v62 = vadd.f32 %v3046_v13, %v2575_v47 }
 0x9ff   : > { %v2591_v42 = vpack.c.bf16 %v2587_v62, %v2586_v20  ;;  %3370 = vmatpush3.bf16.msra.mxu0 %v3488_v33 }
 0xa00   : > { %3371 = vmatprep.subr.bf16.mxu0 %v3489_v22 }
 0xa01   : > { %3362 = vmatmul.mubr.msk.bf16.gmra.mxu1 %vm320_vm0, %v2591_v42 }
 0xa03   : > { %3372 = vmatpush3.bf16.msra.mxu0 %v3489_v22 }
 0xa04   : > { %3373 = vmatprep.subr.bf16.mxu0 %v3490_v53 }
 0xa07   : > { %3374 = vmatpush3.bf16.msra.mxu0 %v3490_v53 }
 0xa08   : > { %3375 = vmatprep.subr.bf16.mxu0 %v3491_v44 }
 0xa0b   : > { %3376 = vmatpush3.bf16.msra.mxu0 %v3491_v44 }
 0xa0c   : > { %3377 = vmatprep.subr.bf16.mxu0 %v3492_v11 }
 0xa0f   : > { %3378 = vmatpush3.bf16.msra.mxu0 %v3492_v11 }
 0xa10   : > { %3379 = vmatprep.subr.bf16.mxu0 %v3493_v6 }
 0xa13   : > { %3380 = vmatpush3.bf16.msra.mxu0 %v3493_v6 }
 0xab4   : > { %v3359_v17 = vpop.f32.mrf.mxu1 }
 0xab5   : > { %v4630_v34 = vadd.f32 %v3359_v17, %v3047_v37 }
 0xab6   : > { %v2661_v38 = vpop.f32.mrf.mxu1 }
 0xab7   : > { %v2702_v52 = vmul.f32 0.044715, %v4630_v34  ;;  %v4633_v35 = vadd.f32 %v3047_v37, %v2661_v38 }
 0xab8   : > { %v3360_v41 = vpop.f32.mrf.mxu1 }
 0xab9   : > { %v2710_v12 = vmul.f32 %v2702_v52, %v4630_v34  ;;  %v2700_v55 = vmul.f32 0.044715, %v4633_v35  ;;  %v2673_v28 = vadd.f32 %v3360_v41, %v3047_v37 }
 0xaba   : > { %v2664_v26 = vpop.f32.mrf.mxu1 }
 0xabb   : > { %v2718_v29 = vmul.f32 %v2710_v12, %v4630_v34  ;;  %v2708_v54 = vmul.f32 %v2700_v55, %v4633_v35  ;;  %v2703_v61 = vmul.f32 0.044715, %v2673_v28  ;;  %v2665_v32 = vadd.f32 %v3047_v37, %v2664_v26 }
 0xabc   : > { %v2695_v26 = vmul.f32 0.5, %v2673_v28 }
 0xabd   : > { %v2726_v58 = vadd.f32 %v2718_v29, %v4630_v34  ;;  %v2716_v39 = vmul.f32 %v2708_v54, %v4633_v35  ;;  %v2711_v25 = vmul.f32 %v2703_v61, %v2673_v28  ;;  %v2701_v13 = vmul.f32 0.044715, %v2665_v32 }
 0xabe   : > { %v2692_v54 = vmul.f32 0.5, %v4633_v35  ;;  %v2693_v61 = vmul.f32 0.5, %v2665_v32 }
 0xabf   : > { %v2734_v59 = vmul.f32 0.7978846, %v2726_v58  ;;  %v2719_v3 = vmul.f32 %v2711_v25, %v2673_v28  ;;  %v2724_v50 = vadd.f32 %v2716_v39, %v4633_v35  ;;  %v2709_v1 = vmul.f32 %v2701_v13, %v2665_v32 }
 0xac0   : > { %v2694_v39 = vmul.f32 0.5, %v4630_v34 }
 0xac1   : > { %v2727_v0 = vadd.f32 %v2719_v3, %v2673_v28  ;;  %v3363_v48 = vpop.f32.mrf.mxu1  ;;  %v2732_v60 = vmul.f32 0.7978846, %v2724_v50  ;;  %v2717_v9 = vmul.f32 %v2709_v1, %v2665_v32  ;;  %3686 = vtanh.f32 %v2734_v59 }
 0xac2   : > { %v4642_v19 = vadd.f32 %v3363_v48, %v3047_v37 }
 0xac3   : > { %v2735_v21 = vmul.f32 0.7978846, %v2727_v0  ;;  %v2677_v56 = vpop.f32.mrf.mxu1  ;;  %v2725_v43 = vadd.f32 %v2717_v9, %v2665_v32  ;;  %3688 = vtanh.f32 %v2732_v60 }
 0xac4   : > { %v2706_v10 = vmul.f32 0.044715, %v4642_v19  ;;  %v2678_v40 = vadd.f32 %v3047_v37, %v2677_v56 }
 0xac5   : > { %3690 = vtanh.f32 %v2735_v21  ;;  %v3364_v16 = vpop.f32.mrf.mxu1  ;;  %v2733_v8 = vmul.f32 0.7978846, %v2725_v43  ;;  %v2698_v43 = vmul.f32 0.5, %v4642_v19 }
 0xac6   : > { %v2714_v2 = vmul.f32 %v2706_v10, %v4642_v19  ;;  %v2704_v46 = vmul.f32 0.044715, %v2678_v40  ;;  %v2689_v4 = vadd.f32 %v3364_v16, %v3047_v37  ;;  %v2696_v32 = vmul.f32 0.5, %v2678_v40 }
 0xac7   : > { %v2680_v30 = vpop.f32.mrf.mxu1  ;;  %3692 = vtanh.f32 %v2733_v8 }
 0xac8   : > { %v2722_v14 = vmul.f32 %v2714_v2, %v4642_v19  ;;  %v2712_v5 = vmul.f32 %v2704_v46, %v2678_v40  ;;  %v2707_v51 = vmul.f32 0.044715, %v2689_v4  ;;  %v2681_v15 = vadd.f32 %v3047_v37, %v2680_v30 }
 0xac9   : > { %v2699_v56 = vmul.f32 0.5, %v2689_v4 }
 0xaca   : > { %v2720_v63 = vmul.f32 %v2712_v5, %v2678_v40  ;;  %v2715_v47 = vmul.f32 %v2707_v51, %v2689_v4  ;;  %v2705_v20 = vmul.f32 0.044715, %v2681_v15  ;;  %v2730_v62 = vadd.f32 %v2722_v14, %v4642_v19  ;;  %v3054_v5 = vld [vmem:[%s4679_s1 + $0x9] ss:$0 sm:$0xff] }
 0xacb   : > { %v2697_v10 = vmul.f32 0.5, %v2681_v15 }
 0xacc   : > { %v2723_v42 = vmul.f32 %v2715_v47, %v2689_v4  ;;  %v2713_v49 = vmul.f32 %v2705_v20, %v2681_v15  ;;  %v2728_v7 = vadd.f32 %v2720_v63, %v2678_v40  ;;  %v2738_v33 = vmul.f32 0.7978846, %v2730_v62 }
 0xace   : > { %v2721_v22 = vmul.f32 %v2713_v49, %v2681_v15  ;;  %v2736_v53 = vmul.f32 0.7978846, %v2728_v7  ;;  %v2731_v44 = vadd.f32 %v2723_v42, %v2689_v4  ;;  %v3687_v11 = vpop.eup %3686 }
 0xacf   : > { %v2750_v29 = vadd.f32 1.0, %v3687_v11 }
 0xad0   : > { %v2729_v6 = vadd.f32 %v2721_v22, %v2681_v15  ;;  %3694 = vtanh.f32 %v2736_v53  ;;  %v2739_v17 = vmul.f32 0.7978846, %v2731_v44  ;;  %v3689_v38 = vpop.eup %3688 }
 0xad1   : > { %3696 = vtanh.f32 %v2738_v33  ;;  %v2748_v12 = vadd.f32 1.0, %v3689_v38  ;;  %v2758_v3 = vmul.f32 %v2750_v29, %v2694_v39 }
 0xad2   : > { %v3691_v37 = vpop.eup %3690  ;;  %v2737_v52 = vmul.f32 0.7978846, %v2729_v6  ;;  %3698 = vtanh.f32 %v2739_v17 }
 0xad3   : > { %v2751_v41 = vadd.f32 1.0, %v3691_v37  ;;  %v2756_v13 = vmul.f32 %v2748_v12, %v2692_v54 }
 0xad4   : > { %3700 = vtanh.f32 %v2737_v52  ;;  %v3693_v55 = vpop.eup %3692 }
 0xad5   : > { %v2749_v58 = vadd.f32 1.0, %v3693_v55  ;;  %v2759_v25 = vmul.f32 %v2751_v41, %v2695_v26 }
 0xad7   : > { %v2757_v59 = vmul.f32 %v2749_v58, %v2693_v61  ;;  %v2765_v1 = vpack.c.bf16 %v2759_v25, %v2758_v3 }
 0xad9   : > { %v2764_v50 = vpack.c.bf16 %v2757_v59, %v2756_v13 }
 0xadb   : > { %3381 = vmatprep.mubr.bf16.mxu0 %v2764_v50 }
 0xadc   : > { %3382 = vmatmul.mubr.bf16.vlgmr.msra.gmra.mxu0 %v2765_v1 }
 0xadd   : > { %v3695_v0 = vpop.eup %3694 }
 0xade   : > { %v3697_v48 = vpop.eup %3696  ;;  %v2752_v9 = vadd.f32 1.0, %v3695_v0 }
 0xadf   : > { %v3699_v60 = vpop.eup %3698  ;;  %v2754_v35 = vadd.f32 1.0, %v3697_v48 }
 0xae0   : > { %v2755_v28 = vadd.f32 1.0, %v3699_v60  ;;  %v2760_v2 = vmul.f32 %v2752_v9, %v2696_v32 }
 0xae1   : > { %v3701_v21 = vpop.eup %3700  ;;  %v2762_v8 = vmul.f32 %v2754_v35, %v2698_v43 }
 0xae2   : > { %v2753_v34 = vadd.f32 1.0, %v3701_v21  ;;  %v2763_v16 = vmul.f32 %v2755_v28, %v2699_v56 }
 0xae4   : > { %v2761_v46 = vmul.f32 %v2753_v34, %v2697_v10  ;;  %v2767_v14 = vpack.c.bf16 %v2763_v16, %v2762_v8 }
 0xae6   : > { %v2766_v30 = vpack.c.bf16 %v2761_v46, %v2760_v2 }
 0xae8   : > { %3385 = vmatprep.mubr.bf16.mxu0 %v2766_v30 }
 0xae9   : > { %3386 = vmatmul.mubr.bf16.gmra.mxu0 %v2767_v14 }
 0xb9c   : > { %v3383_v4 = vpop.f32.mrf.mxu0 }
 0xb9d   : > { %v2880_v51 = vadd.f32 %v3383_v4, %v3054_v5 }
 0xb9e   : > { %v2871_v19 = vpop.f32.mrf.mxu0 }
 0xb9f   : > { %v2904_v40 = vadd.f32 %v2880_v51, %v4412_v18  ;;  %v2872_v15 = vadd.f32 %v3054_v5, %v2871_v19 }
 0xba0   : > { %v3384_v63 = vpop.f32.mrf.mxu0 }
 0xba1   : > { %2912 = vst.msk [vmem:[%s307_s19 + $0x10] sm:$0xff] %vm320_vm0, %v2904_v40  ;;  %v2902_v47 = vadd.f32 %v2872_v15, %v4406_v36  ;;  %v2883_v20 = vadd.f32 %v3384_v63, %v3054_v5 }
 0xba2   : > { %v2874_v62 = vpop.f32.mrf.mxu0 }
 0xba3   : > { %2910 = vst.msk [vmem:[%s307_s19] sm:$0xff] %vm320_vm0, %v2902_v47  ;;  %v2905_v42 = vadd.f32 %v2883_v20, %v4430_v45  ;;  %v2875_v49 = vadd.f32 %v3054_v5, %v2874_v62 }
 0xba5   : > { %2913 = vst.msk [vmem:[%s307_s19 + $0x18] sm:$0xff] %vm320_vm0, %v2905_v42  ;;  %v2903_v7 = vadd.f32 %v2875_v49, %v4425_v57 }
 0xba7   : > { %2911 = vst.msk [vmem:[%s307_s19 + $0x8] sm:$0xff] %vm320_vm0, %v2903_v7 }
 0xba9   : > { %v3387_v18 = vpop.f32.mrf.mxu0 }
 0xbaa   : > { %v2896_v33 = vadd.f32 %v3387_v18, %v3054_v5 }
 0xbab   : > { %v2887_v22 = vpop.f32.mrf.mxu0 }
 0xbac   : > { %v2908_v53 = vadd.f32 %v2896_v33, %v4451_v27  ;;  %v2888_v44 = vadd.f32 %v3054_v5, %v2887_v22 }
 0xbad   : > { %v3388_v36 = vpop.f32.mrf.mxu0 }
 0xbae   : > { %2916 = vst.msk [vmem:[%s307_s19 + $0x30] sm:$0xff] %vm320_vm0, %v2908_v53  ;;  %v2906_v11 = vadd.f32 %v2888_v44, %v4448_v23  ;;  %v2899_v6 = vadd.f32 %v3388_v36, %v3054_v5 }
 0xbaf   : > { %v2890_v45 = vpop.f32.mrf.mxu0 }
 0xbb0   : > { %2914 = vst.msk [vmem:[%s307_s19 + $0x20] sm:$0xff] %vm320_vm0, %v2906_v11  ;;  %v2909_v17 = vadd.f32 %v2899_v6, %v4461_v31  ;;  %v2891_v57 = vadd.f32 %v3054_v5, %v2890_v45 }
 0xbb2   : > { %2917 = vst.msk [vmem:[%s307_s19 + $0x38] sm:$0xff] %vm320_vm0, %v2909_v17  ;;  %v2907_v38 = vadd.f32 %v2891_v57, %v4458_v24 }
 0xbb4   : > { %2915 = vst.msk [vmem:[%s307_s19 + $0x28] sm:$0xff] %vm320_vm0, %v2907_v38 }
 0xbb5 PF: > { %s18_s27 = sadd.s32 1, %s3716_s27  }
 0xbb6   : > { %p15_p4 = scmp.ge.s32.totalorder %s18_s27, 4  }
 0xbb8   :  { %17 = sbr.rel (!%p15_p4) target bundleno = 1 (0x1), region = 82 }

</bundles_post_ra>
